<compile_context>
chip_gen: v5e
topology: v5e:2x2
jax: 0.10.0
libtpu: 0.0.40
codegen_flags: <defaults>
</compile_context>

<pallas_src>
import numpy as np
import jax
import jax.numpy as jnp
from jax.experimental import pallas as pl
from jax.experimental.pallas import tpu as pltpu

_HI = jax.lax.Precision.HIGHEST


def _round_up(n, m):
    return (n + m - 1) // m * m


# --------------------------- VPU tanh (no EUP push) ---------------------------

def _vpu_reciprocal(d):
    """Reciprocal of a strictly-positive f32 array entirely on the VPU:
    exponent-negation bit-trick seed + 3 Newton steps (quadratic -> f32-exact).
    Avoids an EUP vrcp push; the EUP (sin) is this kernel's critical unit."""
    seed = pltpu.bitcast(np.int32(0x7EEEEBB3) - pltpu.bitcast(d, jnp.int32),
                         jnp.float32)
    r = seed
    for _ in range(3):
        r = r * (2.0 - d * r)
    return r


def _vpu_tanh(x):
    """tanh via the [9/8] continued-fraction rational, evaluated only with VPU
    ops (mul/add/clip + the VPU reciprocal above).  |err| <= ~4e-5 globally,
    <= ~1e-6 for |x| <= 4.5.  Pure f32 -> identical behavior on v5e/v6e/v7x."""
    x = jnp.clip(x, -6.0, 6.0)
    a = x * x
    num = x * (2027025.0 + a * (270270.0 + a * (6930.0 + a * 36.0)))
    den = 2027025.0 + a * (945945.0 + a * (51975.0 + a * (630.0 + a)))
    return jnp.clip(num * _vpu_reciprocal(den), -1.0, 1.0)


# ------------------------------- Pallas kernel --------------------------------

def _diffeq_kernel(x_ref, g_ref, phase_ref, wsc_ref, w2b_ref, w3b_ref, o_ref):
    """One body for both t-modes.  Each input row lane-packs 4 original rows.

      z    = x_packed @ G + phase          (one fused MXU matmul)
      pre1 = sin(z[:, :SINW]) @ Wsc + z[:, SINW:]   (sin covers Fourier (+t2v))
      h    = vpu_tanh(pre1)                 (128-lane dense)
      h    = vpu_tanh(h @ W2_blockdiag + b2)
      out  = h @ W3_blockdiag + b3          (packed (tm4, 16))
    """
    sinw = wsc_ref.shape[0]          # packed sin-block width (multiple of 128)
    nh1 = wsc_ref.shape[1]           # d_pack * h1  (= 128)
    nh2 = w2b_ref.shape[1]           # d_pack * h2  (= 128)

    z = (jnp.dot(x_ref[...], g_ref[...], preferred_element_type=jnp.float32)
         + phase_ref[...])
    pre1 = (jnp.dot(jnp.sin(z[:, :sinw]), wsc_ref[...],
                    preferred_element_type=jnp.float32)
            + z[:, sinw:])
    h = _vpu_tanh(pre1)
    pre2 = (jnp.dot(h, w2b_ref[:nh1, :], preferred_element_type=jnp.float32)
            + w2b_ref[nh1:nh1 + 1, :])
    h = _vpu_tanh(pre2)
    o_ref[...] = (jnp.dot(h, w3b_ref[:nh2, :], preferred_element_type=jnp.float32)
                  + w3b_ref[nh2:nh2 + 1, :]).astype(o_ref.dtype)


# ------------------------- host-side weight packing ---------------------------

def pack_params(params, *, d_pack=4):
    """Specialize weights for the kernel:
      * prune masked Fourier frequencies and fold the SAPE mask into W1s/W1c,
      * cos(y) = sin(y + pi/2) so sin+cos is one lane-dense sin,
      * lane-pack d_pack=4 batch rows via block-diagonal G / Wsc / W2 / W3,
      * vector-t: fold Time2Vec (wa, wu*W1u, ba, bu*W1u) into the fused matmul.
    Must NOT be called under jit (reads concrete mask values)."""
    # TODO(synk): re-run pack_params whenever InputMapping.step() grows the
    # incremental mask during training, otherwise stale frequencies are used.
    p = {k: np.asarray(v, np.float32) for k, v in params.items()}
    D, h1 = p["W1x"].shape
    h2 = p["W2"].shape[1]
    t2v = p["wa"].shape[1]
    nh1, nh2 = d_pack * h1, d_pack * h2

    mask = p["mask"].reshape(-1)
    act = np.nonzero(mask != 0.0)[0]
    n_act = int(act.size)
    mcol = mask[act][:, None]

    B_act = p["B"][:, act]                       # (D, n_act)
    W1s_a = p["W1s"][act, :] * mcol              # (n_act, h1), mask folded in
    W1c_a = p["W1c"][act, :] * mcol
    W1x, W1u, W1a, b1 = p["W1x"], p["W1u"], p["W1a"], p["b1"]

    # ---- scalar-t specialization: per-row input is just x (K = D) -----------
    sw_s = 2 * n_act
    sinw_s = max(128, _round_up(d_pack * sw_s, 128))
    zw_s = sinw_s + nh1
    G_s = np.zeros((d_pack * D, zw_s), np.float32)
    phase_sin_s = np.zeros((1, sinw_s), np.float32)
    Wsc_s = np.zeros((sinw_s, nh1), np.float32)
    for r in range(d_pack):
        rx = slice(r * D, (r + 1) * D)
        c0 = r * sw_s
        l0 = sinw_s + r * h1
        G_s[rx, c0:c0 + n_act] = B_act
        G_s[rx, c0 + n_act:c0 + 2 * n_act] = B_act
        G_s[rx, l0:l0 + h1] = W1x
        phase_sin_s[0, c0 + n_act:c0 + 2 * n_act] = np.pi / 2
        Wsc_s[c0:c0 + n_act, r * h1:(r + 1) * h1] = W1s_a
        Wsc_s[c0 + n_act:c0 + 2 * n_act, r * h1:(r + 1) * h1] = W1c_a

    # ---- vector-t specialization: per-row input is [x | t] (K = D + 1) ------
    sw_v = 2 * n_act + t2v
    sinw_v = max(128, _round_up(d_pack * sw_v, 128))
    zw_v = sinw_v + nh1
    K = D + 1
    G_v = np.zeros((d_pack * K, zw_v), np.float32)
    phase_v = np.zeros((1, zw_v), np.float32)
    Wsc_v = np.zeros((sinw_v, nh1), np.float32)
    b1_v = b1 + p["bu"][0, 0] * W1u              # (1, h1)
    for r in range(d_pack):
        rx = slice(r * K, r * K + D)
        rt = r * K + D
        c0 = r * sw_v
        l0 = sinw_v + r * h1
        G_v[rx, c0:c0 + n_act] = B_act
        G_v[rx, c0 + n_act:c0 + 2 * n_act] = B_act
        G_v[rt, c0 + 2 * n_act:c0 + sw_v] = p["wa"][0]
        G_v[rx, l0:l0 + h1] = W1x
        G_v[rt, l0:l0 + h1] = p["wu"][0, 0] * W1u[0]
        phase_v[0, c0 + n_act:c0 + 2 * n_act] = np.pi / 2
        phase_v[0, c0 + 2 * n_act:c0 + sw_v] = p["ba"][0]
        phase_v[0, l0:l0 + h1] = b1_v[0]
        Wsc_v[c0:c0 + n_act, r * h1:(r + 1) * h1] = W1s_a
        Wsc_v[c0 + n_act:c0 + 2 * n_act, r * h1:(r + 1) * h1] = W1c_a
        Wsc_v[c0 + 2 * n_act:c0 + sw_v, r * h1:(r + 1) * h1] = W1a

    # ---- shared FFN tail, block-diagonal over the d_pack packed rows --------
    W2_4 = np.zeros((nh1, nh2), np.float32)
    W3_4 = np.zeros((nh2, d_pack * D), np.float32)
    for r in range(d_pack):
        W2_4[r * h1:(r + 1) * h1, r * h2:(r + 1) * h2] = p["W2"]
        W3_4[r * h2:(r + 1) * h2, r * D:(r + 1) * D] = p["W3"]
    W2b = np.zeros((_round_up(nh1 + 1, 8), nh2), np.float32)
    W2b[:nh1] = W2_4
    W2b[nh1] = np.tile(p["b2"][0], d_pack)
    W3b = np.zeros((_round_up(nh2 + 1, 8), d_pack * D), np.float32)
    W3b[:nh2] = W3_4
    W3b[nh2] = np.tile(p["b3"][0], d_pack)

    jn = lambda a: jnp.asarray(a, jnp.float32)
    return dict(
        D=D, h1=h1, d_pack=d_pack,
        G_s=jn(G_s), phase_sin_s=jn(phase_sin_s), Wsc_s=jn(Wsc_s),
        G_v=jn(G_v), phase_v=jn(phase_v), Wsc_v=jn(Wsc_v),
        W2b=jn(W2b), W3b=jn(W3b),
        # raw Time2Vec / b1 pieces for the per-call scalar-t bias fold
        wu=jn(p["wu"]), bu=jn(p["bu"]), wa=jn(p["wa"]), ba=jn(p["ba"]),
        W1u=jn(W1u), W1a=jn(W1a), b1=jn(b1),
    )


# ---------------------------------- wrapper ------------------------------------

def diffeq_net_pallas(t, state, packed, *, tm=2048):
    """DiffeqNet forward. t: scalar or (N,)/(N,1); state: (..., D).
    tm = batch tile in ORIGINAL rows (4 rows are lane-packed per vreg row).
    Call under jax.jit so the small per-call host-side folds fuse."""
    D, h1, dp = packed["D"], packed["h1"], packed["d_pack"]

    x = state.reshape(-1, D).astype(jnp.float32)
    N = x.shape[0]
    t = jnp.asarray(t, jnp.float32)
    scalar_t = (t.size == 1)

    # ---- lane-pack dp rows per packed row ------------------------------------
    Np = _round_up(max(N, 1), dp)
    if Np != N:
        x = jnp.concatenate([x, jnp.zeros((Np - N, D), jnp.float32)], axis=0)
    N4 = Np // dp

    if scalar_t:
        xp = x.reshape(N4, dp * D)                          # free metadata reshape
        # Hoist Time2Vec out of the kernel: fold u*W1u + a@W1a + b1 into phase.
        ts = t.reshape(())
        u = ts * packed["wu"] + packed["bu"]                # (1, 1)
        a = jnp.sin(ts * packed["wa"] + packed["ba"])       # (1, T2V)
        b1_eff = (packed["b1"] + u * packed["W1u"]
                  + jnp.dot(a, packed["W1a"], precision=_HI))
        phase = jnp.concatenate(
            [packed["phase_sin_s"], jnp.tile(b1_eff, (1, dp))], axis=1)
        G, Wsc = packed["G_s"], packed["Wsc_s"]
    else:
        tv = t.reshape(-1, 1)
        assert tv.shape[0] == N, "t must be scalar or have one entry per row"
        if Np != N:
            tv = jnp.concatenate([tv, jnp.zeros((Np - N, 1), jnp.float32)], axis=0)
        # interleave [x | t] per row, then pack 4 rows per packed row
        xp = jnp.concatenate([x, tv], axis=1).reshape(N4, dp * (D + 1))
        phase, G, Wsc = packed["phase_v"], packed["G_v"], packed["Wsc_v"]

    xw = xp.shape[1]

    # ---- row tiling over packed rows ------------------------------------------
    tm4 = max(8, (tm // dp) // 8 * 8)
    N4_8 = _round_up(N4, 8)
    if N4_8 <= tm4:
        # keep >=2 grid steps when possible so the "parallel" axis can shard
        # across both TensorCores on v7x (harmless on single-TC v5e/v6e).
        tm4 = max(8, _round_up(-(-N4_8 // 2), 8))
    N4_pad = _round_up(N4_8, tm4)
    if N4_pad != N4:
        xp = jnp.concatenate(
            [xp, jnp.zeros((N4_pad - N4, xw), jnp.float32)], axis=0)
    grid = (N4_pad // tm4,)

    def const_spec(a):
        # constant index_map -> same block every grid step -> no per-step re-DMA
        return pl.BlockSpec(a.shape, lambda i: (0, 0))

    out = pl.pallas_call(
        _diffeq_kernel,
        out_shape=jax.ShapeDtypeStruct((N4_pad, dp * D), jnp.float32),
        grid=grid,
        in_specs=[pl.BlockSpec((tm4, xw), lambda i: (i, 0)),
                  const_spec(G), const_spec(phase), const_spec(Wsc),
                  const_spec(packed["W2b"]), const_spec(packed["W3b"])],
        out_specs=pl.BlockSpec((tm4, dp * D), lambda i: (i, 0)),
        compiler_params=pltpu.CompilerParams(dimension_semantics=("parallel",)),
    )(xp, G, phase, Wsc, packed["W2b"], packed["W3b"])

    return out.reshape(N4_pad * dp, D)[:N]


# ------------------------- deterministic parameter init -----------------------

def init_params(key, *, d=4, n_freq=128, sigma=2.0, t2v_dims=64, hidden=(32, 32)):
    ks = jax.random.split(key, 10)

    # Time2Vec: Linear(1,1) and Linear(1, t2v_dims)
    wu = jax.random.normal(ks[0], (1, 1), jnp.float32)
    bu = jax.random.normal(ks[1], (1, 1), jnp.float32) * 0.1
    wa = jax.random.normal(ks[2], (1, t2v_dims), jnp.float32)
    ba = jax.random.normal(ks[3], (1, t2v_dims), jnp.float32) * 0.1

    # InputMapping: B ~ randn(d, n_freq) * pi * sigma / sqrt(d), rows sorted by norm
    B = jax.random.normal(ks[4], (d, n_freq), jnp.float32) * np.pi * sigma / np.sqrt(d)
    order = jnp.argsort(jnp.linalg.norm(B, axis=1))
    B = B[order, :]
    # incrementalMask=True -> emulate step(0.35): n_freq // 2 frequencies unmasked
    mask = jnp.concatenate(
        [jnp.ones((1, n_freq // 2), jnp.float32),
         jnp.zeros((1, n_freq - n_freq // 2), jnp.float32)], axis=1)

    # FFN: Linear(d_in, 32) -> tanh -> Linear(32, 32) -> tanh -> Linear(32, d)
    d_in = (1 + t2v_dims) + (2 * n_freq + d)          # 65 + 260 = 325
    h1, h2 = hidden

    def linear(k, fan_in, fan_out):
        bound = 1.0 / np.sqrt(fan_in)
        kw, kb = jax.random.split(k)
        W = jax.random.uniform(kw, (fan_in, fan_out), jnp.float32, -bound, bound)
        b = jax.random.uniform(kb, (1, fan_out), jnp.float32, -bound, bound)
        return W, b

    W1, b1 = linear(ks[5], d_in, h1)
    W2, b2 = linear(ks[6], h1, h2)
    W3, b3 = linear(ks[7], h2, d)

    # Split W1 by input segment: [u(1) | a(t2v) | sin(n_freq) | cos(n_freq) | x(d)]
    o0, o1, o2, o3 = 1, 1 + t2v_dims, 1 + t2v_dims + n_freq, 1 + t2v_dims + 2 * n_freq
    return dict(
        wu=wu, bu=bu, wa=wa, ba=ba, B=B, mask=mask,
        W1u=W1[:o0], W1a=W1[o0:o1], W1s=W1[o1:o2], W1c=W1[o2:o3], W1x=W1[o3:],
        b1=b1, W2=W2, b2=b2, W3=W3, b3=b3,
        _W1_full=W1,   # kept only for the pure-JAX reference check
    )


# ------------------------------- pure-JAX reference ----------------------------

def diffeq_net_ref(t, state, p):
    dot = lambda a, b: jnp.dot(a, b, precision=_HI)
    D = p["W1x"].shape[0]
    x = state.reshape(-1, D).astype(jnp.float32)
    N = x.shape[0]
    t = jnp.asarray(t, jnp.float32).reshape(-1, 1)
    if t.size == 1:
        t = jnp.broadcast_to(t, (N, 1))

    u = dot(t, p["wu"]) + p["bu"]
    a = jnp.sin(dot(t, p["wa"]) + p["ba"])
    y = dot(x, p["B"])
    feat = jnp.concatenate([jnp.sin(y) * p["mask"], jnp.cos(y) * p["mask"], x], axis=-1)
    ffn_in = jnp.concatenate([u, a, feat], axis=-1)
    h = jnp.tanh(dot(ffn_in, p["_W1_full"]) + p["b1"])
    h = jnp.tanh(dot(h, p["W2"]) + p["b2"])
    return dot(h, p["W3"]) + p["b3"]


# ------------------------------------ main --------------------------------------

if __name__ == "__main__":
    key = jax.random.PRNGKey(0)
    kp, ks, kt = jax.random.split(key, 3)

    D = 4          # vector_field_dims
    params = init_params(kp, d=D, n_freq=128, t2v_dims=64, hidden=(32, 32))
    packed = pack_params(params)

    # jit the wrapper so per-call host-side folds fuse (review item #8)
    fwd = jax.jit(lambda t, s: diffeq_net_pallas(t, s, packed))
    fwd_small = jax.jit(lambda t, s: diffeq_net_pallas(t, s, packed, tm=64))

    # Case 1: scalar t (common ODE-solver case), N not a multiple of 4
    #         -> exercises the row-packing pad + t2v folded into phase.
    N1 = 25
    state1 = jax.random.normal(ks, (N1, D), jnp.float32)
    t1 = jnp.float32(0.37)
    out1 = jax.block_until_ready(fwd(t1, state1))
    ref1 = diffeq_net_ref(t1, state1, params)
    np.testing.assert_allclose(np.asarray(out1), np.asarray(ref1), rtol=1e-4, atol=1e-4)

    # Case 2: per-row t with a small tile -> multi-step grid + batch padding,
    #         Time2Vec folded into the single fused matmul.
    N2 = 132
    state2 = jax.random.normal(kt, (N2, D), jnp.float32)
    t2 = jnp.linspace(0.0, 1.0, N2, dtype=jnp.float32)
    out2 = jax.block_until_ready(fwd_small(t2, state2))
    ref2 = diffeq_net_ref(t2, state2, params)
    np.testing.assert_allclose(np.asarray(out2), np.asarray(ref2), rtol=1e-4, atol=1e-4)

    print("KERNEL_OK")
</pallas_src>

<mosaic_0001>
module attributes {stable_mosaic.version = 11 : i64} {
  func.func @_diffeq_kernel(%arg0: i32, %arg1: memref<8x16xf32, #tpu.memory_space<vmem>>, %arg2: memref<16x640xf32, #tpu.memory_space<vmem>>, %arg3: memref<1x640xf32, #tpu.memory_space<vmem>>, %arg4: memref<512x128xf32, #tpu.memory_space<vmem>>, %arg5: memref<136x128xf32, #tpu.memory_space<vmem>>, %arg6: memref<136x16xf32, #tpu.memory_space<vmem>>, %arg7: memref<8x16xf32, #tpu.memory_space<vmem>>) attributes {dimension_semantics = [#tpu.dimension_semantics<parallel>], iteration_bounds = array<i64: 1>, scalar_prefetch = 0 : i64, scratch_operands = 0 : i64, tpu.core_type = #tpu.core_type<tc>, window_params = [{transform_indices = @transform_0, window_bounds = array<i64: 8, 16>}, {pipeline_mode = #tpu.pipeline_mode<synchronous>, transform_indices = @transform_1, window_bounds = array<i64: 16, 640>}, {pipeline_mode = #tpu.pipeline_mode<synchronous>, transform_indices = @transform_2, window_bounds = array<i64: 1, 640>}, {pipeline_mode = #tpu.pipeline_mode<synchronous>, transform_indices = @transform_3, window_bounds = array<i64: 512, 128>}, {pipeline_mode = #tpu.pipeline_mode<synchronous>, transform_indices = @transform_4, window_bounds = array<i64: 136, 128>}, {pipeline_mode = #tpu.pipeline_mode<synchronous>, transform_indices = @transform_5, window_bounds = array<i64: 136, 16>}, {transform_indices = @transform_6, window_bounds = array<i64: 8, 16>}]} {
    %c0 = arith.constant 0 : index
    %c0_0 = arith.constant 0 : index
    %0 = vector.load %arg1[%c0, %c0_0] : memref<8x16xf32, #tpu.memory_space<vmem>>, vector<8x16xf32>
    %c0_1 = arith.constant 0 : index
    %c0_2 = arith.constant 0 : index
    %1 = vector.load %arg2[%c0_1, %c0_2] : memref<16x640xf32, #tpu.memory_space<vmem>>, vector<16x640xf32>
    %cst = arith.constant dense<0.000000e+00> : vector<8x640xf32>
    %2 = tpu.matmul %0, %1, %cst {dimension_numbers = #tpu.dot_dimension_numbers<[1], [0], [0], [1], [0, 0, 1, 1], [], []>} : vector<8x16xf32>, vector<16x640xf32>, vector<8x640xf32> -> vector<8x640xf32>
    %c0_3 = arith.constant 0 : index
    %c0_4 = arith.constant 0 : index
    %3 = vector.load %arg3[%c0_3, %c0_4] : memref<1x640xf32, #tpu.memory_space<vmem>>, vector<1x640xf32>
    %4 = vector.broadcast %3 : vector<1x640xf32> to vector<8x640xf32>
    %5 = arith.addf %2, %4 : vector<8x640xf32>
    %6 = vector.extract_strided_slice %5 {offsets = [0, 0], sizes = [8, 512], strides = [1, 1]} : vector<8x640xf32> to vector<8x512xf32>
    %7 = math.sin %6 : vector<8x512xf32>
    %c0_5 = arith.constant 0 : index
    %c0_6 = arith.constant 0 : index
    %8 = vector.load %arg4[%c0_5, %c0_6] : memref<512x128xf32, #tpu.memory_space<vmem>>, vector<512x128xf32>
    %cst_7 = arith.constant dense<0.000000e+00> : vector<8x128xf32>
    %9 = tpu.matmul %7, %8, %cst_7 {dimension_numbers = #tpu.dot_dimension_numbers<[1], [0], [0], [1], [0, 0, 1, 1], [], []>} : vector<8x512xf32>, vector<512x128xf32>, vector<8x128xf32> -> vector<8x128xf32>
    %10 = vector.extract_strided_slice %5 {offsets = [0, 512], sizes = [8, 128], strides = [1, 1]} : vector<8x640xf32> to vector<8x128xf32>
    %11 = arith.addf %9, %10 : vector<8x128xf32>
    %cst_8 = arith.constant -6.000000e+00 : f32
    %cst_9 = arith.constant 6.000000e+00 : f32
    %12 = vector.broadcast %cst_8 : f32 to vector<8x128xf32>
    %13 = arith.maximumf %12, %11 : vector<8x128xf32>
    %14 = vector.broadcast %cst_9 : f32 to vector<8x128xf32>
    %15 = arith.minimumf %14, %13 : vector<8x128xf32>
    %16 = arith.mulf %15, %15 : vector<8x128xf32>
    %cst_10 = arith.constant 3.600000e+01 : f32
    %17 = vector.broadcast %cst_10 : f32 to vector<8x128xf32>
    %18 = arith.mulf %16, %17 : vector<8x128xf32>
    %cst_11 = arith.constant 6.930000e+03 : f32
    %19 = vector.broadcast %cst_11 : f32 to vector<8x128xf32>
    %20 = arith.addf %19, %18 : vector<8x128xf32>
    %21 = arith.mulf %16, %20 : vector<8x128xf32>
    %cst_12 = arith.constant 2.702700e+05 : f32
    %22 = vector.broadcast %cst_12 : f32 to vector<8x128xf32>
    %23 = arith.addf %22, %21 : vector<8x128xf32>
    %24 = arith.mulf %16, %23 : vector<8x128xf32>
    %cst_13 = arith.constant 0x49F77088 : f32
    %25 = vector.broadcast %cst_13 : f32 to vector<8x128xf32>
    %26 = arith.addf %25, %24 : vector<8x128xf32>
    %27 = arith.mulf %15, %26 : vector<8x128xf32>
    %cst_14 = arith.constant 6.300000e+02 : f32
    %28 = vector.broadcast %cst_14 : f32 to vector<8x128xf32>
    %29 = arith.addf %28, %16 : vector<8x128xf32>
    %30 = arith.mulf %16, %29 : vector<8x128xf32>
    %cst_15 = arith.constant 5.197500e+04 : f32
    %31 = vector.broadcast %cst_15 : f32 to vector<8x128xf32>
    %32 = arith.addf %31, %30 : vector<8x128xf32>
    %33 = arith.mulf %16, %32 : vector<8x128xf32>
    %cst_16 = arith.constant 9.459450e+05 : f32
    %34 = vector.broadcast %cst_16 : f32 to vector<8x128xf32>
    %35 = arith.addf %34, %33 : vector<8x128xf32>
    %36 = arith.mulf %16, %35 : vector<8x128xf32>
    %cst_17 = arith.constant 0x49F77088 : f32
    %37 = vector.broadcast %cst_17 : f32 to vector<8x128xf32>
    %38 = arith.addf %37, %36 : vector<8x128xf32>
    %39 = tpu.bitcast %38 : vector<8x128xf32> -> vector<8x128xi32>
    %c2129587123_i32 = arith.constant 2129587123 : i32
    %40 = vector.broadcast %c2129587123_i32 : i32 to vector<8x128xi32>
    %41 = arith.subi %40, %39 : vector<8x128xi32>
    %42 = tpu.bitcast %41 : vector<8x128xi32> -> vector<8x128xf32>
    %43 = arith.mulf %38, %42 : vector<8x128xf32>
    %cst_18 = arith.constant 2.000000e+00 : f32
    %44 = vector.broadcast %cst_18 : f32 to vector<8x128xf32>
    %45 = arith.subf %44, %43 : vector<8x128xf32>
    %46 = arith.mulf %42, %45 : vector<8x128xf32>
    %47 = arith.mulf %38, %46 : vector<8x128xf32>
    %cst_19 = arith.constant 2.000000e+00 : f32
    %48 = vector.broadcast %cst_19 : f32 to vector<8x128xf32>
    %49 = arith.subf %48, %47 : vector<8x128xf32>
    %50 = arith.mulf %46, %49 : vector<8x128xf32>
    %51 = arith.mulf %38, %50 : vector<8x128xf32>
    %cst_20 = arith.constant 2.000000e+00 : f32
    %52 = vector.broadcast %cst_20 : f32 to vector<8x128xf32>
    %53 = arith.subf %52, %51 : vector<8x128xf32>
    %54 = arith.mulf %50, %53 : vector<8x128xf32>
    %55 = arith.mulf %27, %54 : vector<8x128xf32>
    %cst_21 = arith.constant -1.000000e+00 : f32
    %cst_22 = arith.constant 1.000000e+00 : f32
    %56 = vector.broadcast %cst_21 : f32 to vector<8x128xf32>
    %57 = arith.maximumf %56, %55 : vector<8x128xf32>
    %58 = vector.broadcast %cst_22 : f32 to vector<8x128xf32>
    %59 = arith.minimumf %58, %57 : vector<8x128xf32>
    %c0_23 = arith.constant 0 : index
    %c0_24 = arith.constant 0 : index
    %60 = vector.load %arg5[%c0_23, %c0_24] : memref<136x128xf32, #tpu.memory_space<vmem>>, vector<128x128xf32>
    %cst_25 = arith.constant dense<0.000000e+00> : vector<8x128xf32>
    %61 = tpu.matmul %59, %60, %cst_25 {dimension_numbers = #tpu.dot_dimension_numbers<[1], [0], [0], [1], [0, 0, 1, 1], [], []>} : vector<8x128xf32>, vector<128x128xf32>, vector<8x128xf32> -> vector<8x128xf32>
    %c128 = arith.constant 128 : index
    %c0_26 = arith.constant 0 : index
    %62 = vector.load %arg5[%c128, %c0_26] : memref<136x128xf32, #tpu.memory_space<vmem>>, vector<1x128xf32>
    %63 = vector.broadcast %62 : vector<1x128xf32> to vector<8x128xf32>
    %64 = arith.addf %61, %63 : vector<8x128xf32>
    %cst_27 = arith.constant -6.000000e+00 : f32
    %cst_28 = arith.constant 6.000000e+00 : f32
    %65 = vector.broadcast %cst_27 : f32 to vector<8x128xf32>
    %66 = arith.maximumf %65, %64 : vector<8x128xf32>
    %67 = vector.broadcast %cst_28 : f32 to vector<8x128xf32>
    %68 = arith.minimumf %67, %66 : vector<8x128xf32>
    %69 = arith.mulf %68, %68 : vector<8x128xf32>
    %cst_29 = arith.constant 3.600000e+01 : f32
    %70 = vector.broadcast %cst_29 : f32 to vector<8x128xf32>
    %71 = arith.mulf %69, %70 : vector<8x128xf32>
    %cst_30 = arith.constant 6.930000e+03 : f32
    %72 = vector.broadcast %cst_30 : f32 to vector<8x128xf32>
    %73 = arith.addf %72, %71 : vector<8x128xf32>
    %74 = arith.mulf %69, %73 : vector<8x128xf32>
    %cst_31 = arith.constant 2.702700e+05 : f32
    %75 = vector.broadcast %cst_31 : f32 to vector<8x128xf32>
    %76 = arith.addf %75, %74 : vector<8x128xf32>
    %77 = arith.mulf %69, %76 : vector<8x128xf32>
    %cst_32 = arith.constant 0x49F77088 : f32
    %78 = vector.broadcast %cst_32 : f32 to vector<8x128xf32>
    %79 = arith.addf %78, %77 : vector<8x128xf32>
    %80 = arith.mulf %68, %79 : vector<8x128xf32>
    %cst_33 = arith.constant 6.300000e+02 : f32
    %81 = vector.broadcast %cst_33 : f32 to vector<8x128xf32>
    %82 = arith.addf %81, %69 : vector<8x128xf32>
    %83 = arith.mulf %69, %82 : vector<8x128xf32>
    %cst_34 = arith.constant 5.197500e+04 : f32
    %84 = vector.broadcast %cst_34 : f32 to vector<8x128xf32>
    %85 = arith.addf %84, %83 : vector<8x128xf32>
    %86 = arith.mulf %69, %85 : vector<8x128xf32>
    %cst_35 = arith.constant 9.459450e+05 : f32
    %87 = vector.broadcast %cst_35 : f32 to vector<8x128xf32>
    %88 = arith.addf %87, %86 : vector<8x128xf32>
    %89 = arith.mulf %69, %88 : vector<8x128xf32>
    %cst_36 = arith.constant 0x49F77088 : f32
    %90 = vector.broadcast %cst_36 : f32 to vector<8x128xf32>
    %91 = arith.addf %90, %89 : vector<8x128xf32>
    %92 = tpu.bitcast %91 : vector<8x128xf32> -> vector<8x128xi32>
    %c2129587123_i32_37 = arith.constant 2129587123 : i32
    %93 = vector.broadcast %c2129587123_i32_37 : i32 to vector<8x128xi32>
    %94 = arith.subi %93, %92 : vector<8x128xi32>
    %95 = tpu.bitcast %94 : vector<8x128xi32> -> vector<8x128xf32>
    %96 = arith.mulf %91, %95 : vector<8x128xf32>
    %cst_38 = arith.constant 2.000000e+00 : f32
    %97 = vector.broadcast %cst_38 : f32 to vector<8x128xf32>
    %98 = arith.subf %97, %96 : vector<8x128xf32>
    %99 = arith.mulf %95, %98 : vector<8x128xf32>
    %100 = arith.mulf %91, %99 : vector<8x128xf32>
    %cst_39 = arith.constant 2.000000e+00 : f32
    %101 = vector.broadcast %cst_39 : f32 to vector<8x128xf32>
    %102 = arith.subf %101, %100 : vector<8x128xf32>
    %103 = arith.mulf %99, %102 : vector<8x128xf32>
    %104 = arith.mulf %91, %103 : vector<8x128xf32>
    %cst_40 = arith.constant 2.000000e+00 : f32
    %105 = vector.broadcast %cst_40 : f32 to vector<8x128xf32>
    %106 = arith.subf %105, %104 : vector<8x128xf32>
    %107 = arith.mulf %103, %106 : vector<8x128xf32>
    %108 = arith.mulf %80, %107 : vector<8x128xf32>
    %cst_41 = arith.constant -1.000000e+00 : f32
    %cst_42 = arith.constant 1.000000e+00 : f32
    %109 = vector.broadcast %cst_41 : f32 to vector<8x128xf32>
    %110 = arith.maximumf %109, %108 : vector<8x128xf32>
    %111 = vector.broadcast %cst_42 : f32 to vector<8x128xf32>
    %112 = arith.minimumf %111, %110 : vector<8x128xf32>
    %c0_43 = arith.constant 0 : index
    %c0_44 = arith.constant 0 : index
    %113 = vector.load %arg6[%c0_43, %c0_44] : memref<136x16xf32, #tpu.memory_space<vmem>>, vector<128x16xf32>
    %cst_45 = arith.constant dense<0.000000e+00> : vector<8x16xf32>
    %114 = tpu.matmul %112, %113, %cst_45 {dimension_numbers = #tpu.dot_dimension_numbers<[1], [0], [0], [1], [0, 0, 1, 1], [], []>} : vector<8x128xf32>, vector<128x16xf32>, vector<8x16xf32> -> vector<8x16xf32>
    %c128_46 = arith.constant 128 : index
    %c0_47 = arith.constant 0 : index
    %115 = vector.load %arg6[%c128_46, %c0_47] : memref<136x16xf32, #tpu.memory_space<vmem>>, vector<1x16xf32>
    %116 = vector.broadcast %115 : vector<1x16xf32> to vector<8x16xf32>
    %117 = arith.addf %114, %116 : vector<8x16xf32>
    %c0_48 = arith.constant 0 : index
    %c0_49 = arith.constant 0 : index
    %118 = vector.load %arg7[%c0_48, %c0_49] : memref<8x16xf32, #tpu.memory_space<vmem>>, vector<8x16xf32>
    tpu.vector_store %arg7[%c0_48, %c0_49], %117 {strides = array<i32>} : memref<8x16xf32, #tpu.memory_space<vmem>>, vector<8x16xf32>,
    return
  }
  func.func @transform_0(%arg0: i32) -> (i32, i32) {
    %c0_i32 = arith.constant 0 : i32
    %c0_i32_0 = arith.constant 0 : i32
    return %arg0, %c0_i32 : i32, i32
  }
  func.func @transform_1(%arg0: i32) -> (i32, i32) {
    %c0_i32 = arith.constant 0 : i32
    %c0_i32_0 = arith.constant 0 : i32
    %c0_i32_1 = arith.constant 0 : i32
    return %c0_i32, %c0_i32_0 : i32, i32
  }
  func.func @transform_2(%arg0: i32) -> (i32, i32) {
    %c0_i32 = arith.constant 0 : i32
    %c0_i32_0 = arith.constant 0 : i32
    %c0_i32_1 = arith.constant 0 : i32
    return %c0_i32, %c0_i32_0 : i32, i32
  }
  func.func @transform_3(%arg0: i32) -> (i32, i32) {
    %c0_i32 = arith.constant 0 : i32
    %c0_i32_0 = arith.constant 0 : i32
    %c0_i32_1 = arith.constant 0 : i32
    return %c0_i32, %c0_i32_0 : i32, i32
  }
  func.func @transform_4(%arg0: i32) -> (i32, i32) {
    %c0_i32 = arith.constant 0 : i32
    %c0_i32_0 = arith.constant 0 : i32
    %c0_i32_1 = arith.constant 0 : i32
    return %c0_i32, %c0_i32_0 : i32, i32
  }
  func.func @transform_5(%arg0: i32) -> (i32, i32) {
    %c0_i32 = arith.constant 0 : i32
    %c0_i32_0 = arith.constant 0 : i32
    %c0_i32_1 = arith.constant 0 : i32
    return %c0_i32, %c0_i32_0 : i32, i32
  }
  func.func @transform_6(%arg0: i32) -> (i32, i32) {
    %c0_i32 = arith.constant 0 : i32
    %c0_i32_0 = arith.constant 0 : i32
    return %arg0, %c0_i32 : i32, i32
  }
}

</mosaic_0001>

<bundles_post_ra>
// kernel: _lambda_.1
= control target key start
LH: loop header
LB: loop body
LE: loop exit
PB: predicated region body
PF: predicated region fallthrough
CT: control target
= control target key end

     0   :  { %11 = vsyncpa [#allocation3], 0  ;;  %s1968_s0 = inlined_call_operand.vmem [shape: f32[8,16], index: 0, kind: input, shape index: {}]   ;;  %s1969_s1 = inlined_call_operand.vmem [shape: f32[16,640], index: 1, kind: input, shape index: {}]   ;;  %s1970_s2 = inlined_call_operand.vmem [shape: f32[1,640], index: 2, kind: input, shape index: {}]   ;;  %s1971_s3 = inlined_call_operand.hbm [shape: f32[512,128], index: 3, kind: input, shape index: {}]   ;;  %s1972_s4 = inlined_call_operand.hbm [shape: f32[136,128], index: 4, kind: input, shape index: {}]   ;;  %s1973_s5 = inlined_call_operand.hbm [shape: f32[136,16], index: 5, kind: input, shape index: {}]   ;;  %s1974_s6 = inlined_call_operand.vmem [shape: f32[8,16], index: 6, kind: output, shape index: {}]  }
   0x1   :  { %12 = vsyncpa [#allocation5], 0  ;;  %s36_s23 = sshll.u32 %s1972_s4, 4  ;;  %s1220_s24 = smov [#allocation4]   ;;  %s37_s23 = int_to_ptr.hbm [resolvable:$true] %s36_s23 }
   0x2   :  { %s38_s25 = sshll.u32 %s1220_s24, 4  ;;  %s23_s28 = sshll.u32 %s1971_s3, 4  ;;  %s39_s25 = int_to_ptr.vmem [resolvable:$true] %s38_s25  ;;  %s24_s28 = int_to_ptr.hbm [resolvable:$true] %s23_s28 }
   0x3   :  { %s1221_s29 = smov 128   ;;  %s1222_s30 = smov 8  }
   0x4   :  { %44 = dma.hbm_to_vmem [thread:$0]  %s37_s23, 2176, %s39_s25, [#allocation5], %s1221_s29, %s1221_s29, %s1222_s30  }
   0x5   :  { %s1223_s7 = smov [#allocation2]   ;;  %s49_s11 = sshll.u32 %s1973_s5, 4  ;;  %s50_s11 = int_to_ptr.hbm [resolvable:$true] %s49_s11 }
   0x6   :  { %s25_s8 = sshll.u32 %s1223_s7, 4  ;;  %s1224_s4 = smov [#allocation6]   ;;  %s26_s8 = int_to_ptr.vmem [resolvable:$true] %s25_s8 }
   0x7   :  { %31 = dma.hbm_to_vmem [thread:$0]  %s24_s28, 8192, %s26_s8, [#allocation3], %s1221_s29, %s1221_s29, %s1222_s30  }
   0x8   :  { %s51_s12 = sshll.u32 %s1224_s4, 4  ;;  %s52_s12 = int_to_ptr.vmem [resolvable:$true] %s51_s12 }
   0x9   :  { %57 = dma.hbm_to_vmem [thread:$0]  %s50_s11, 2176, %s52_s12, [#allocation5], %s1221_s29, %s1221_s29, %s1222_s30  }
   0xa   :  { %1216 = dma.done.wait [#allocation3], 8192  }
   0xb   :  { %1217 = vsyncadd [#allocation3], 4294959104 }
   0xc   :  { %1218 = dma.done.wait [#allocation5], 4352  }
   0xd   :  { %1219 = vsyncadd [#allocation5], 4294962944  ;;  %v76_v0 = vld [vmem:[%s1969_s1 + $0x28] sm:$0xff]  ;;  %v77_v1 = vld [vmem:[%s1969_s1 + $0x30] sm:$0xff]  ;;  %vm93_vm0 = vcmask 130048  }
   0xe   :  { %v71_v2 = vld [vmem:[%s1969_s1] sm:$0xff]  ;;  %111 = vmatpush.msra.mxu0 %v76_v0  ;;  %131 = vmatpush.msra.mxu3 %v77_v1  ;;  %v72_v3 = vld [vmem:[%s1969_s1 + $0x8] sm:$0xff]  ;;  %v78_v5 = vld [vmem:[%s1969_s1 + $0x38] sm:$0xff]  ;;  %v1225_v41 = vmov 920167782  }
   0xf   :  { %v1291_v4 = vld [vmem:[%s1968_s0] sm:$0xff]  ;;  %v73_v7 = vld [vmem:[%s1969_s1 + $0x10] sm:$0xff]  ;;  %v74_v8 = vld [vmem:[%s1969_s1 + $0x18] sm:$0xff]  ;;  %v1978_v45 = vmov 2102212464  }
  0x10   :  { %v79_v6 = vld [vmem:[%s1969_s1 + $0x40] sm:$0xff]  ;;  %112 = vmatpush.msra.mxu0 %v71_v2  ;;  %132 = vmatpush.msra.mxu3 %v72_v3  ;;  %v1227_v49 = vmov 1326507024   ;;  %v1228_v57 = vmov 2475754826  }
  0x11   :  { %1108 = vmatmul.msk.f32.vlgmr.msra.gmra.mxu0 %vm93_vm0, %v1291_v4  ;;  %1109 = vmatmul.msk.f32.vlgmr.msra.gmra.mxu3 %vm93_vm0, %v1291_v4  ;;  %v81_v9 = vld [vmem:[%s1970_s2] sm:$0x1f]  ;;  %v1229_v59 = vmov 2131351028  }
  0x12   :  { %151 = vmatpush.msrb.mxu0 %v78_v5  ;;  %171 = vmatpush.msrb.mxu3 %v79_v6  ;;  %v83_v10 = vperm.slane %v81_v9, 0  ;;  %v84_v14 = vperm.slane %v81_v9, 1  ;;  %v85_v16 = vperm.slane %v81_v9, 2  ;;  %v86_v40 = vperm.slane %v81_v9, 3 }
  0x13   :  { %v1230_v9 = vmov 683565275  }
  0x14   :  { %152 = vmatpush.msrb.mxu0 %v73_v7  ;;  %172 = vmatpush.msrb.mxu3 %v74_v8 }
  0x19   :  { %1110 = vmatmul.msk.f32.vlgmr.msrb.gmra.mxu0 %vm93_vm0, %v1291_v4  ;;  %1111 = vmatmul.msk.f32.vlgmr.msrb.gmra.mxu3 %vm93_vm0, %v1291_v4 }
  0x8e   :  { %v114_v11 = vpop.f32.mrf.mxu0 }
  0x8f   :  { %v1316_v12 = vadd.f32 %v114_v11, %v83_v10 }
  0x91   :  { %v200_v13 = vand.u32 2139095040, %v1316_v12  ;;  %v1977_v31 = vand.u32 2147483647, %v1316_v12 }
  0x93   :  { %v201_v15 = vshrl.u32 %v200_v13, 23  ;;  %v1334_v36 = vand.u32 8388607, %v1977_v31  ;;  %v821_v31 = vld [vmem:[#allocation2 + $0x20] sm:$0xff] }
  0x94   :  { %v134_v17 = vpop.f32.mrf.mxu3 }
  0x95   :  { %v1113_v18 = vadd.s32 4294967169, %v201_v15  ;;  %v1319_v19 = vadd.f32 %v134_v17, %v84_v14  ;;  %v205_v48 = vor.u32 8388608, %v1334_v36  ;;  %v832_v17 = vld [vmem:[#allocation2 + $0x78] sm:$0xff]  ;;  %v847_v36 = vld [vmem:[#allocation2 + $0xf0] sm:$0xff] }
  0x96   :  { %v154_v20 = vpop.f32.mrf.mxu0  ;;  %881 = vmatpush.msra.mxu1 %v832_v17 }
  0x97   :  { %v207_v21 = vadd.s32 1, %v1113_v18  ;;  %v355_v22 = vand.u32 2139095040, %v1319_v19  ;;  %v1322_v23 = vadd.f32 %v154_v20, %v85_v16  ;;  %v831_v18 = vld [vmem:[#allocation2 + $0x70] sm:$0xff] }
  0x98   :  { %882 = vmatpush.msra.mxu1 %v831_v18  ;;  %v827_v18 = vld [vmem:[#allocation2 + $0x50] sm:$0xff] }
  0x99   :  { %vm208_vm1 = vcmp.gt.s32.totalorder %v207_v21, 0  ;;  %v356_v24 = vshrl.u32 %v355_v22, 23  ;;  %v510_v26 = vand.u32 2139095040, %v1322_v23  ;;  %v1976_v32 = vand.u32 2147483647, %v1322_v23 }
  0x9a   :  { %v209_v25 = vsel %vm208_vm1, %v207_v21, 0 }
  0x9b   :  { %v1325_v27 = vand.u32 31, %v209_v25  ;;  %v511_v28 = vshrl.u32 %v510_v26, 23  ;;  %v1116_v29 = vadd.s32 4294967169, %v356_v24  ;;  %v1336_v37 = vshrl.u32 %v209_v25, 5 }
  0x9c   :  { %v514_v38 = vand.u32 8388607, %v1976_v32  ;;  %v174_v43 = vpop.f32.mrf.mxu3  ;;  %v839_v32 = vld [vmem:[#allocation2 + $0xb0] sm:$0xff] }
  0x9d   :  { %v1119_v30 = vadd.s32 4294967169, %v511_v28  ;;  %v1330_v33 = vsub.s32 32, %v1325_v27  ;;  %v362_v35 = vadd.s32 1, %v1116_v29  ;;  %v223_v46 = vshll.u32 %v1978_v45, %v1325_v27  ;;  %v830_v28 = vld [vmem:[#allocation2 + $0x68] sm:$0xff]  ;;  %v848_v29 = vld [vmem:[#allocation2 + $0xf8] sm:$0xff] }
  0x9e   :  { %v1346_v47 = vshll.u32 %v1225_v41, %v1325_v27  ;;  %vm232_vm4 = vcmp.lt.s32.totalorder %v1336_v37, 4  ;;  %v515_v51 = vor.u32 8388608, %v514_v38  ;;  %v1354_v53 = vadd.f32 %v174_v43, %v86_v40  ;;  %901 = vmatpush.msra.mxu2 %v848_v29  ;;  %v864_v38 = vld [vmem:[#allocation2 + $0x178] sm:$0xff]  ;;  %883 = vmatpush.msra.mxu1 %v830_v28 }
  0x9f   :  { %v517_v34 = vadd.s32 1, %v1119_v30  ;;  %v224_v42 = vshrl.u32 %v1225_v41, %v1330_v33  ;;  %vm363_vm3 = vcmp.gt.s32.totalorder %v362_v35, 0  ;;  %v1351_v50 = vshrl.u32 %v1227_v49, %v1330_v33  ;;  %921 = vmatpush.msra.mxu3 %v864_v38  ;;  %v860_v38 = vld [vmem:[#allocation2 + $0x158] sm:$0xff] }
  0xa0   :  { %v364_v55 = vsel %vm363_vm3, %v362_v35, 0  ;;  %v665_v8 = vand.u32 2139095040, %v1354_v53  ;;  %v1377_v15 = vshll.u32 %v515_v51, 8  ;;  %v1975_v16 = vand.u32 2147483647, %v1354_v53  ;;  %902 = vmatpush.msra.mxu2 %v847_v36  ;;  %v826_v36 = vld [vmem:[#allocation2 + $0x48] sm:$0xff] }
  0xa1   :  { %vm518_vm2 = vcmp.gt.s32.totalorder %v517_v34, 0  ;;  %v1356_v54 = vor.u32 %v224_v42, %v223_v46  ;;  %v1369_v5 = vand.u32 31, %v364_v55  ;;  %v228_v20 = vor.u32 %v1351_v50, %v1346_v47  ;;  %v863_v46 = vld [vmem:[#allocation2 + $0x170] sm:$0xff] }
  0xa2   :  { %v519_v39 = vsel %vm518_vm2, %v517_v34, 0  ;;  %v666_v26 = vshrl.u32 %v665_v8, 23  ;;  %v1404_v40 = vshrl.u32 %v364_v55, 5  ;;  %v1411_v47 = vshrl.u32 %v1230_v9, %v1330_v33  ;;  %922 = vmatpush.msra.mxu3 %v863_v46 }
  0xa3   :  { %v521_v44 = vand.u32 31, %v519_v39  ;;  %v1358_v56 = vshrl.u32 %v519_v39, 5  ;;  %v1393_v30 = vsel %vm232_vm4, %v1356_v54, 920167782  ;;  %v1396_v34 = vsub.s32 32, %v1369_v5 }
  0xa4   :  { %v1402_v39 = vshll.u32 %v205_v48, 8  ;;  %v1122_v55 = vadd.s32 4294967169, %v666_v26  ;;  %vm387_vm9 = vcmp.lt.s32.totalorder %v1404_v40, 4  ;;  %v215_v26 = vshrl.u32 %v1228_v57, %v1330_v33 }
  0xa5   :  { %v522_v52 = vsub.s32 32, %v521_v44  ;;  %v527_v58 = vshll.u32 %v1228_v57, %v521_v44  ;;  %v530_v61 = vshll.u32 %v1229_v59, %v521_v44  ;;  %v533_v63 = vshll.u32 %v1978_v45, %v521_v44 }
  0xa6   :  { %v536_v2 = vshll.u32 %v1225_v41, %v521_v44  ;;  %v524_v10 = vshll.u32 %v1230_v9, %v521_v44  ;;  %vm539_vm5 = vcmp.lt.s32.totalorder %v1358_v56, 1  ;;  %vm542_vm6 = vcmp.lt.s32.totalorder %v1358_v56, 4  ;;  %v829_v44 = vld [vmem:[#allocation2 + $0x60] sm:$0xff] }
  0xa7   :  { %v528_v60 = vshrl.u32 %v1229_v59, %v522_v52  ;;  %v531_v62 = vshrl.u32 %v1978_v45, %v522_v52  ;;  %v525_v0 = vshrl.u32 %v1228_v57, %v522_v52  ;;  %v534_v1 = vshrl.u32 %v1225_v41, %v522_v52  ;;  %884 = vmatpush.msra.mxu1 %v829_v44 }
  0xa8   :  { %v537_v3 = vshrl.u32 %v1227_v49, %v522_v52  ;;  %vm541_vm7 = vcmp.lt.s32.totalorder %v1358_v56, 3  ;;  %vm540_vm8 = vcmp.lt.s32.totalorder %v1358_v56, 2  ;;  %v523_v50 = vshrl.u32 %v1230_v9, %v522_v52  ;;  %v843_v56 = vld [vmem:[#allocation2 + $0xd0] sm:$0xff] }
  0xa9   :  { %v529_v6 = vor.u32 %v528_v60, %v527_v58  ;;  %v532_v7 = vor.u32 %v531_v62, %v530_v61  ;;  %v535_v11 = vor.u32 %v534_v1, %v533_v63  ;;  %v526_v21 = vor.u32 %v525_v0, %v524_v10  ;;  %v846_v58 = vld [vmem:[#allocation2 + $0xe8] sm:$0xff]  ;;  %v828_v63 = vld [vmem:[#allocation2 + $0x58] sm:$0xff]  ;;  %v845_v10 = vld [vmem:[#allocation2 + $0xe0] sm:$0xff] }
  0xaa   :  { %v538_v13 = vor.u32 %v537_v3, %v536_v2  ;;  %v80_v60 = vld [vmem:[%s1969_s1 + $0x48] sm:$0xff]  ;;  %v1423_v61 = vsel %vm232_vm4, %v228_v20, 1326507024  ;;  %v1426_v52 = vand.u32 65535, %v1377_v15  ;;  %v1429_v62 = vshrl.u32 %v1377_v15, 16  ;;  %903 = vmatpush.msra.mxu2 %v846_v58  ;;  %v861_v20 = vld [vmem:[#allocation2 + $0x160] sm:$0xff]  ;;  %885 = vmatpush.msra.mxu1 %v828_v63 }
  0xab   :  { %v551_v14 = vsel %vm539_vm5, %v529_v6, %v532_v7  ;;  %v548_v24 = vsel %vm542_vm6, %v535_v11, 920167782  ;;  %v544_v42 = vsel %vm542_vm6, %v532_v7, 2102212464  ;;  %v547_v48 = vsel %vm539_vm5, %v526_v21, %v529_v6  ;;  %v862_v0 = vld [vmem:[#allocation2 + $0x168] sm:$0xff]  ;;  %191 = vmatpush.msra.mxu0 %v80_v60  ;;  %v825_v60 = vld [vmem:[#allocation2 + $0x40] sm:$0xff] }
  0xac   :  { %v552_v22 = vsel %vm542_vm6, %v538_v13, 1326507024  ;;  %v549_v51 = vsel %vm541_vm7, %v532_v7, %v548_v24  ;;  %v214_v1 = vshll.u32 %v1230_v9, %v1325_v27  ;;  %v378_v2 = vshll.u32 %v1978_v45, %v1369_v5  ;;  %923 = vmatpush.msra.mxu3 %v862_v0  ;;  %v844_v24 = vld [vmem:[#allocation2 + $0xd8] sm:$0xff]  ;;  %904 = vmatpush.msra.mxu2 %v845_v10  ;;  %v859_v63 = vld [vmem:[#allocation2 + $0x150] sm:$0xff]  ;;  %v842_v10 = vld [vmem:[#allocation2 + $0xc8] sm:$0xff] }
  0xad   :  { %v553_v25 = vsel %vm541_vm7, %v535_v11, %v552_v22  ;;  %v379_v3 = vshrl.u32 %v1225_v41, %v1396_v34  ;;  %v543_v7 = vsel %vm539_vm5, %v523_v50, %v526_v21  ;;  %v545_v8 = vsel %vm541_vm7, %v529_v6, %v544_v42  ;;  %v75_v11 = vld [vmem:[%s1969_s1 + $0x20] sm:$0xff]  ;;  %886 = vmatpush.msra.mxu1 %v827_v18 }
  0xae   :  { %v1400_v35 = vsel %vm540_vm8, %v551_v14, %v553_v25  ;;  %v1446_v13 = vshll.u32 %v1225_v41, %v1369_v5  ;;  %v1450_v14 = vsel %vm540_vm8, %v547_v48, %v549_v51  ;;  %v672_v6 = vadd.s32 1, %v1122_v55  ;;  %v880_v25 = vld [vmem:[#allocation2 + $0x1f8] sm:$0xff]  ;;  %192 = vmatpush.msra.mxu0 %v75_v11  ;;  %924 = vmatpush.msra.mxu3 %v861_v20  ;;  %v879_v51 = vld [vmem:[#allocation2 + $0x1f0] sm:$0xff] }
  0xaf   :  { %v559_v43 = vshrl.u32 %v1400_v35, 16  ;;  %v1459_v21 = vshrl.u32 %v1227_v49, %v1396_v34  ;;  %v1464_v22 = vand.u32 8388607, %v1975_v16  ;;  %v1470_v28 = vsel %vm540_vm8, %v543_v7, %v545_v8  ;;  %905 = vmatpush.msra.mxu2 %v844_v24  ;;  %887 = vmatpush.msra.mxu1 %v826_v36  ;;  %v824_v20 = vld [vmem:[#allocation2 + $0x38] sm:$0xff]  ;;  %v877_v36 = vld [vmem:[#allocation2 + $0x1e0] sm:$0xff] }
  0xb0   :  { %v558_v29 = vand.u32 65535, %v1400_v35  ;;  %vm673_vm10 = vcmp.gt.s32.totalorder %v672_v6, 0  ;;  %v217_v42 = vshll.u32 %v1228_v57, %v1325_v27  ;;  %v1475_v44 = vor.u32 %v379_v3, %v378_v2  ;;  %941 = vmatpush.msrb.mxu0 %v880_v25  ;;  %925 = vmatpush.msra.mxu3 %v860_v38  ;;  %v840_v16 = vld [vmem:[#allocation2 + $0xb8] sm:$0xff] }
  0xb1   :  { %v1455_v17 = vmul.u32 %v559_v43, %v1426_v52  ;;  %v580_v46 = vand.u32 65535, %v1450_v14  ;;  %v581_v50 = vshrl.u32 %v1450_v14, 16  ;;  %v674_v48 = vsel %vm673_vm10, %v672_v6, 0  ;;  %906 = vmatpush.msra.mxu2 %v843_v56  ;;  %888 = vmatpush.msra.mxu1 %v825_v60  ;;  %v856_v7 = vld [vmem:[#allocation2 + $0x138] sm:$0xff] }
  0xb2   :  { %v676_v58 = vand.u32 31, %v674_v48  ;;  %v218_v0 = vshrl.u32 %v1229_v59, %v1330_v33  ;;  %v221_v2 = vshrl.u32 %v1978_v45, %v1330_v33  ;;  %v383_v3 = vor.u32 %v1459_v21, %v1446_v13  ;;  %942 = vmatpush.msrb.mxu0 %v879_v51  ;;  %v878_v13 = vld [vmem:[#allocation2 + $0x1e8] sm:$0xff]  ;;  %926 = vmatpush.msra.mxu3 %v859_v63 }
  0xb3   :  { %v564_v55 = vshll.u32 %v1455_v17, 16  ;;  %v670_v8 = vor.u32 8388608, %v1464_v22  ;;  %v1489_v11 = vor.u32 %v215_v26, %v214_v1  ;;  %v1492_v6 = vmul.u32 %v558_v29, %v1426_v52  ;;  %v858_v26 = vld [vmem:[#allocation2 + $0x148] sm:$0xff]  ;;  %907 = vmatpush.msra.mxu2 %v842_v10  ;;  %889 = vmatpush.msra.mxu1 %v824_v20  ;;  %v857_v10 = vld [vmem:[#allocation2 + $0x140] sm:$0xff] }
  0xb4   :  { %v1495_v18 = vmul.u32 %v558_v29, %v1429_v62  ;;  %v1497_v33 = vsub.s32 32, %v676_v58  ;;  %v220_v21 = vshll.u32 %v1229_v59, %v1325_v27  ;;  %v1504_v1 = vsel %vm387_vm9, %v1475_v44, 920167782  ;;  %v841_v27 = vld [vmem:[#allocation2 + $0xc0] sm:$0xff]  ;;  %v823_v29 = vld [vmem:[#allocation2 + $0x30] sm:$0xff]  ;;  %943 = vmatpush.msrb.mxu0 %v878_v13  ;;  %927 = vmatpush.msra.mxu3 %v858_v26 }
  0xb5   :  { %v1509_v22 = vmul.u32 %v559_v43, %v1429_v62  ;;  %v1514_v24 = vmul.u32 %v580_v46, %v1426_v52  ;;  %v1519_v25 = vmul.u32 %v581_v50, %v1426_v52  ;;  %vm1524_vm11 = vc.u32 %v1492_v6, %v564_v55  ;;  %908 = vmatpush.msra.mxu2 %v841_v27 }
  0xb6   :  { %v688_v43 = vshll.u32 %v1978_v45, %v676_v58  ;;  %v1529_v38 = vor.u32 %v218_v0, %v217_v42  ;;  %v1531_v52 = vor.u32 %v221_v2, %v220_v21  ;;  %v689_v56 = vshrl.u32 %v1225_v41, %v1497_v33  ;;  %v822_v21 = vld [vmem:[#allocation2 + $0x28] sm:$0xff]  ;;  %890 = vmatpush.msra.mxu1 %v823_v29  ;;  %v875_v29 = vld [vmem:[#allocation2 + $0x1d0] sm:$0xff] }
  0xb7   :  { %v1536_v51 = vshll.u32 %v1225_v41, %v676_v58  ;;  %v692_v60 = vshrl.u32 %v1227_v49, %v1497_v33  ;;  %v1540_v63 = vshll.u32 %v670_v8, 8  ;;  %v1544_v42 = vsel %vm387_vm9, %v383_v3, 1326507024  ;;  %v876_v49 = vld [vmem:[#allocation2 + $0x1d8] sm:$0xff]  ;;  %944 = vmatpush.msrb.mxu0 %v877_v36  ;;  %909 = vmatpush.msra.mxu2 %v840_v16 }
  0xb8   :  { %v679_v0 = vshll.u32 %v1230_v9, %v676_v58  ;;  %v682_v2 = vshll.u32 %v1228_v57, %v676_v58  ;;  %v685_v41 = vshll.u32 %v1229_v59, %v676_v58  ;;  %v1549_v8 = vshrl.u32 %v674_v48, 5  ;;  %928 = vmatpush.msra.mxu3 %v857_v10  ;;  %891 = vmatpush.msra.mxu1 %v822_v21  ;;  %v838_v58 = vld [vmem:[#allocation2 + $0xa8] sm:$0xff] }
  0xb9   :  { %v680_v20 = vshrl.u32 %v1228_v57, %v1497_v33  ;;  %v683_v13 = vshrl.u32 %v1229_v59, %v1497_v33  ;;  %v686_v3 = vshrl.u32 %v1978_v45, %v1497_v33  ;;  %v1561_v48 = vmul.u32 %v580_v46, %v1429_v62  ;;  %945 = vmatpush.msrb.mxu0 %v876_v49  ;;  %v855_v46 = vld [vmem:[#allocation2 + $0x130] sm:$0xff] }
  0xba   :  { %v1566_v27 = vmul.u32 %v581_v50, %v1429_v62  ;;  %v690_v26 = vor.u32 %v689_v56, %v688_v43  ;;  %v693_v36 = vor.u32 %v692_v60, %v1536_v51  ;;  %v1570_v45 = vand.u32 65535, %v1540_v63  ;;  %v820_v50 = vld [vmem:[#allocation2 + $0x18] sm:$0xff]  ;;  %910 = vmatpush.msra.mxu2 %v839_v32  ;;  %929 = vmatpush.msra.mxu3 %v856_v7  ;;  %v874_v43 = vld [vmem:[#allocation2 + $0x1c8] sm:$0xff]  ;;  %v837_v32 = vld [vmem:[#allocation2 + $0xa0] sm:$0xff] }
  0xbb   :  { %vm229_vm12 = vcmp.lt.s32.totalorder %v1336_v37, 1  ;;  %vm231_vm13 = vcmp.lt.s32.totalorder %v1336_v37, 3  ;;  %v1231_v62 = vmov 0   ;;  %v1578_v14 = vshrl.u32 %v1540_v63, 16  ;;  %892 = vmatpush.msra.mxu1 %v821_v31  ;;  %946 = vmatpush.msrb.mxu0 %v875_v29  ;;  %v819_v49 = vld [vmem:[#allocation2 + $0x10] sm:$0xff] }
  0xbc   :  { %v569_v16 = vsel %vm1524_vm11, 1, %v1231_v62  ;;  %v237_v56 = vsel %vm229_vm12, %v1489_v11, %v1529_v38  ;;  %v239_v51 = vsel %vm231_vm13, %v1531_v52, %v1393_v30  ;;  %v1588_v60 = vor.u32 %v680_v20, %v679_v0  ;;  %911 = vmatpush.msra.mxu2 %v838_v58  ;;  %930 = vmatpush.msra.mxu3 %v855_v46  ;;  %v854_v0 = vld [vmem:[#allocation2 + $0x128] sm:$0xff]  ;;  %v853_v58 = vld [vmem:[#allocation2 + $0x120] sm:$0xff] }
  0xbd   :  { %v1590_v35 = vor.u32 %v683_v13, %v682_v2  ;;  %v687_v10 = vor.u32 %v686_v3, %v685_v41  ;;  %vm697_vm14 = vcmp.lt.s32.totalorder %v1549_v8, 4  ;;  %v1596_v7 = vadd.s32 %v564_v55, %v1492_v6  ;;  %893 = vmatpush.msra.mxu1 %v820_v50  ;;  %947 = vmatpush.msrb.mxu0 %v874_v43  ;;  %v873_v55 = vld [vmem:[#allocation2 + $0x1c0] sm:$0xff]  ;;  %v818_v20 = vld [vmem:[#allocation2 + $0x8] sm:$0xff]  ;;  %v872_v50 = vld [vmem:[#allocation2 + $0x1b8] sm:$0xff] }
  0xbe   :  { %v703_v21 = vsel %vm697_vm14, %v690_v26, 920167782  ;;  %vm230_vm15 = vcmp.lt.s32.totalorder %v1336_v37, 2  ;;  %v234_v30 = vsel %vm232_vm4, %v1531_v52, 2102212464  ;;  %v241_v2 = vsel %vm229_vm12, %v1529_v38, %v1531_v52  ;;  %912 = vmatpush.msra.mxu2 %v837_v32  ;;  %931 = vmatpush.msra.mxu3 %v854_v0  ;;  %v817_v46 = vld [vmem:[#allocation2] sm:$0xff] }
  0xbf   :  { %v707_v31 = vsel %vm697_vm14, %v693_v36, 1326507024  ;;  %v240_v6 = vsel %vm230_vm15, %v237_v56, %v239_v51  ;;  %v243_v41 = vsel %vm231_vm13, %v1356_v54, %v1423_v61  ;;  %vm694_vm1 = vcmp.lt.s32.totalorder %v1549_v8, 1  ;;  %894 = vmatpush.msra.mxu1 %v819_v49  ;;  %v836_v61 = vld [vmem:[#allocation2 + $0x98] sm:$0xff]  ;;  %948 = vmatpush.msrb.mxu0 %v873_v55 }
  0xc0   :  { %vm696_vm2 = vcmp.lt.s32.totalorder %v1549_v8, 3  ;;  %v233_v13 = vsel %vm229_vm12, %v1411_v47, %v1489_v11  ;;  %v246_v3 = vand.u32 65535, %v1402_v39  ;;  %v702_v52 = vsel %vm694_vm1, %v1588_v60, %v1590_v35  ;;  %1112 = vmatmul.msk.f32.vlgmr.msra.gmra.mxu0 %vm93_vm0, %v1291_v4  ;;  %913 = vmatpush.msra.mxu2 %v836_v61 }
  0xc1   :  { %v706_v54 = vsel %vm694_vm1, %v1590_v35, %v687_v10  ;;  %v235_v29 = vsel %vm231_vm13, %v1529_v38, %v234_v30  ;;  %v247_v47 = vshrl.u32 %v1402_v39, 16  ;;  %v704_v11 = vsel %vm696_vm2, %v687_v10, %v703_v21  ;;  %895 = vmatpush.msra.mxu1 %v818_v20  ;;  %932 = vmatpush.msra.mxu3 %v853_v58 }
  0xc2   :  { %v708_v36 = vsel %vm696_vm2, %v690_v26, %v707_v31  ;;  %v244_v43 = vsel %vm230_vm15, %v241_v2, %v243_v41  ;;  %v270_v56 = vand.u32 65535, %v240_v6  ;;  %v271_v32 = vshrl.u32 %v240_v6, 16  ;;  %949 = vmatpush.msrb.mxu0 %v872_v50 }
  0xc3   :  { %v248_v38 = vand.u32 65535, %v244_v43  ;;  %v249_v51 = vshrl.u32 %v244_v43, 16  ;;  %v1979_v21 = vand.u32 2147483647, %v1319_v19  ;;  %v1644_v49 = vadd.s32 %v569_v16, %v1509_v22  ;;  %896 = vmatpush.msra.mxu1 %v817_v46 }
  0xc4   :  { %v1648_v26 = vshrl.u32 %v1230_v9, %v1497_v33  ;;  %vm695_vm3 = vcmp.lt.s32.totalorder %v1549_v8, 2  ;;  %v1653_v30 = vsel %vm230_vm15, %v233_v13, %v235_v29  ;;  %v1657_v4 = vsel %vm697_vm14, %v687_v10, 2102212464 }
  0xc5   :  { %v1661_v22 = vsel %vm695_vm3, %v702_v52, %v704_v11  ;;  %v251_v33 = vmul.u32 %v249_v51, %v246_v3  ;;  %v252_v16 = vmul.u32 %v248_v38, %v247_v47  ;;  %v1665_v31 = vsel %vm695_vm3, %v706_v54, %v708_v36 }
  0xc6   :  { %v272_v0 = vmul.u32 %v270_v56, %v246_v3  ;;  %v273_v37 = vmul.u32 %v271_v32, %v246_v3  ;;  %v274_v55 = vmul.u32 %v270_v56, %v247_v47  ;;  %v250_v6 = vmul.u32 %v248_v38, %v246_v3 }
  0xc7   :  { %v253_v2 = vmul.u32 %v249_v51, %v247_v47  ;;  %v254_v41 = vshll.u32 %v251_v33, 16  ;;  %v359_v10 = vand.u32 8388607, %v1979_v21  ;;  %v255_v20 = vshrl.u32 %v251_v33, 16 }
  0xc8   :  { %v256_v13 = vshll.u32 %v252_v16, 16  ;;  %v257_v52 = vshrl.u32 %v252_v16, 16  ;;  %v276_v61 = vshll.u32 %v273_v37, 16  ;;  %v275_v29 = vmul.u32 %v271_v32, %v247_v47 }
  0xc9   :  { %vm258_vm4 = vc.u32 %v250_v6, %v254_v41  ;;  %v260_v58 = vadd.s32 %v254_v41, %v250_v6  ;;  %v277_v11 = vshrl.u32 %v273_v37, 16  ;;  %v278_v36 = vshll.u32 %v274_v55, 16 }
  0xca   :  { %v259_v54 = vsel %vm258_vm4, 1, %v1231_v62  ;;  %vm280_vm5 = vc.u32 %v272_v0, %v276_v61  ;;  %v282_v46 = vadd.s32 %v276_v61, %v272_v0  ;;  %v360_v43 = vor.u32 8388608, %v359_v10 }
  0xcb   :  { %v261_v50 = vadd.s32 %v259_v54, %v253_v2  ;;  %vm262_vm6 = vc.u32 %v260_v58, %v256_v13  ;;  %v281_v3 = vsel %vm280_vm5, 1, %v1231_v62  ;;  %v369_v51 = vshll.u32 %v1230_v9, %v1369_v5 }
  0xcc   :  { %v263_v56 = vsel %vm262_vm6, 1, %v1231_v62  ;;  %v283_v38 = vadd.s32 %v281_v3, %v275_v29  ;;  %vm284_vm7 = vc.u32 %v282_v46, %v278_v36  ;;  %v370_v32 = vshrl.u32 %v1228_v57, %v1396_v34 }
  0xcd   :  { %v265_v33 = vadd.s32 %v263_v56, %v261_v50  ;;  %v285_v47 = vsel %vm284_vm7, 1, %v1231_v62  ;;  %v372_v16 = vshll.u32 %v1228_v57, %v1369_v5  ;;  %v373_v37 = vshrl.u32 %v1229_v59, %v1396_v34 }
  0xce   :  { %v287_v0 = vadd.s32 %v285_v47, %v283_v38  ;;  %v375_v6 = vshll.u32 %v1229_v59, %v1369_v5  ;;  %v1982_v2 = vmov 2102212464   ;;  %v279_v13 = vshrl.u32 %v274_v55, 16 }
  0xcf   :  { %v376_v41 = vshrl.u32 %v1982_v2, %v1396_v34  ;;  %v266_v10 = vadd.s32 %v265_v33, %v255_v20  ;;  %v1685_v61 = vadd.s32 %v282_v46, %v278_v36  ;;  %v371_v58 = vor.u32 %v370_v32, %v369_v51 }
  0xd0   :  { %v288_v29 = vadd.s32 %v287_v0, %v277_v11  ;;  %v374_v54 = vor.u32 %v373_v37, %v372_v16  ;;  %vm384_vm8 = vcmp.lt.s32.totalorder %v1404_v40, 1  ;;  %vm385_vm10 = vcmp.lt.s32.totalorder %v1404_v40, 2 }
  0xd1   :  { %v377_v50 = vor.u32 %v376_v41, %v375_v6  ;;  %v1688_v57 = vadd.s32 %v266_v10, %v257_v52  ;;  %vm386_vm11 = vcmp.lt.s32.totalorder %v1404_v40, 3  ;;  %v1692_v59 = vshll.u32 %v360_v43, 8 }
  0xd2   :  { %v289_v5 = vadd.s32 %v288_v29, %v279_v13  ;;  %v392_v55 = vsel %vm384_vm8, %v371_v58, %v374_v54  ;;  %v398_v52 = vsel %vm386_vm11, %v1475_v44, %v1544_v42  ;;  %v713_v11 = vand.u32 65535, %v1665_v31 }
  0xd3   :  { %v394_v20 = vsel %vm386_vm11, %v377_v50, %v1504_v1  ;;  %v714_v36 = vshrl.u32 %v1665_v31, 16  ;;  %vm292_vm12 = vc.u32 %v1688_v57, %v1685_v61  ;;  %v290_v3 = vmul.u32 %v1402_v39, %v1653_v30 }
  0xd4   :  { %v395_v46 = vsel %vm385_vm10, %v392_v55, %v394_v20  ;;  %v293_v43 = vadd.s32 1, %v289_v5  ;;  %v396_v1 = vsel %vm384_vm8, %v374_v54, %v377_v50  ;;  %v401_v56 = vand.u32 65535, %v1692_v59 }
  0xd5   :  { %v399_v44 = vsel %vm385_vm10, %v396_v1, %v398_v52  ;;  %v402_v42 = vshrl.u32 %v1692_v59, 16  ;;  %v425_v38 = vand.u32 65535, %v395_v46  ;;  %v426_v51 = vshrl.u32 %v395_v46, 16 }
  0xd6   :  { %v735_v33 = vand.u32 65535, %v1661_v22  ;;  %v294_v47 = vsel %vm292_vm12, %v293_v43, %v289_v5  ;;  %v403_v32 = vand.u32 65535, %v399_v44  ;;  %v404_v16 = vshrl.u32 %v399_v44, 16 }
  0xd7   :  { %v736_v39 = vshrl.u32 %v1661_v22, 16  ;;  %v295_v30 = vadd.s32 %v294_v47, %v290_v3  ;;  %v428_v0 = vmul.u32 %v426_v51, %v401_v56  ;;  %v429_v37 = vmul.u32 %v425_v38, %v402_v42 }
  0xd8   :  { %v1722_v6 = vmul.u32 %v714_v36, %v1570_v45  ;;  %v368_v2 = vshrl.u32 %v1230_v9, %v1396_v34  ;;  %v406_v41 = vmul.u32 %v404_v16, %v401_v56  ;;  %v407_v10 = vmul.u32 %v403_v32, %v402_v42 }
  0xd9   :  { %v296_v13 = vadd.s32 536870912, %v295_v30  ;;  %v389_v29 = vsel %vm387_vm9, %v377_v50, 2102212464  ;;  %v427_v5 = vmul.u32 %v425_v38, %v401_v56  ;;  %v431_v55 = vshll.u32 %v428_v0, 16 }
  0xda   :  { %v405_v20 = vmul.u32 %v403_v32, %v401_v56  ;;  %v408_v52 = vmul.u32 %v404_v16, %v402_v42  ;;  %v409_v46 = vshll.u32 %v406_v41, 16  ;;  %v430_v3 = vmul.u32 %v426_v51, %v402_v42 }
  0xdb   :  { %v1728_v43 = vshrl.u32 %v296_v13, 30  ;;  %v411_v1 = vshll.u32 %v407_v10, 16  ;;  %v433_v44 = vshll.u32 %v429_v37, 16  ;;  %vm435_vm13 = vc.u32 %v427_v5, %v431_v55 }
  0xdc   :  { %vm413_vm14 = vc.u32 %v405_v20, %v409_v46  ;;  %v415_v47 = vadd.s32 %v409_v46, %v405_v20  ;;  %v436_v9 = vsel %vm435_vm13, 1, %v1231_v62  ;;  %v437_v34 = vadd.s32 %v431_v55, %v427_v5 }
  0xdd   :  { %v298_v21 = vshll.u32 %v1728_v43, 30  ;;  %v388_v50 = vsel %vm384_vm8, %v368_v2, %v371_v58  ;;  %v414_v56 = vsel %vm413_vm14, 1, %v1231_v62  ;;  %v438_v38 = vadd.s32 %v436_v9, %v430_v3 }
  0xde   :  { %v390_v42 = vsel %vm386_vm11, %v374_v54, %v389_v29  ;;  %v416_v51 = vadd.s32 %v414_v56, %v408_v52  ;;  %vm417_vm9 = vc.u32 %v415_v47, %v411_v1  ;;  %vm439_vm15 = vc.u32 %v437_v34, %v433_v44 }
  0xdf   :  { %v1740_v32 = vmul.u32 %v713_v11, %v1578_v14  ;;  %v299_v16 = vsub.s32 %v295_v30, %v298_v21  ;;  %v418_v13 = vsel %vm417_vm9, 1, %v1231_v62  ;;  %v440_v5 = vsel %vm439_vm15, 1, %v1231_v62 }
  0xe0   :  { %v410_v58 = vshrl.u32 %v406_v41, 16  ;;  %v420_v2 = vadd.s32 %v418_v13, %v416_v51  ;;  %v432_v55 = vshrl.u32 %v428_v0, 16  ;;  %v442_v20 = vadd.s32 %v440_v5, %v438_v38 }
  0xe1   :  { %v719_v46 = vshll.u32 %v1722_v6, 16  ;;  %vm300_vm4 = vcmp.lt.s32.totalorder %v299_v16, 0  ;;  %v301_v54 = vsub.s32 0, %v299_v16  ;;  %v391_v29 = vsel %vm385_vm10, %v388_v50, %v390_v42 }
  0xe2   :  { %v412_v52 = vshrl.u32 %v407_v10, 16  ;;  %v421_v3 = vadd.s32 %v420_v2, %v410_v58  ;;  %v434_v1 = vshrl.u32 %v429_v37, 16  ;;  %v443_v47 = vadd.s32 %v442_v20, %v432_v55 }
  0xe3   :  { %v302_v21 = vsel %vm300_vm4, %v301_v54, %v299_v16  ;;  %v1747_v30 = vadd.s32 %v437_v34, %v433_v44  ;;  %v1983_v9 = vshll.u32 %v1495_v18, 16  ;;  %v586_v0 = vshll.u32 %v1519_v25, 16 }
  0xe4   :  { %v303_v41 = vclz %v302_v21  ;;  %v1753_v56 = vadd.s32 %v421_v3, %v412_v52  ;;  %v444_v38 = vadd.s32 %v443_v47, %v434_v1  ;;  %v715_v37 = vmul.u32 %v713_v11, %v1570_v45 }
  0xe5   :  { %vm572_vm5 = vc.u32 %v1596_v7, %v1983_v9  ;;  %v718_v10 = vmul.u32 %v714_v36, %v1578_v14  ;;  %v565_v44 = vshrl.u32 %v1455_v17, 16  ;;  %v1767_v34 = vmul.u32 %v736_v39, %v1570_v45 }
  0xe6   :  { %v573_v40 = vsel %vm572_vm5, 1, %v1231_v62  ;;  %v1114_v50 = vadd.s32 4294967294, %v303_v41  ;;  %vm447_vm6 = vc.u32 %v1753_v56, %v1747_v30  ;;  %v448_v42 = vadd.s32 1, %v444_v38 }
  0xe7   :  { %v575_v7 = vadd.s32 %v573_v40, %v1644_v49  ;;  %v721_v11 = vshll.u32 %v1740_v32, 16  ;;  %vm1772_vm7 = vc.u32 %v715_v37, %v719_v46  ;;  %v445_v17 = vmul.u32 %v1692_v59, %v391_v29  ;;  %v871_v40 = vld [vmem:[#allocation2 + $0x1b0] sm:$0xff] }
  0xe8   :  { %vm1115_vm8 = vcmp.lt.s32.totalorder %v1114_v50, 0  ;;  %v449_v49 = vsel %vm447_vm6, %v448_v42, %v444_v38  ;;  %vm590_vm10 = vc.u32 %v1514_v24, %v586_v0  ;;  %v592_v36 = vadd.s32 %v586_v0, %v1514_v24  ;;  %v852_v38 = vld [vmem:[#allocation2 + $0x118] sm:$0xff]  ;;  %950 = vmatpush.msrb.mxu0 %v871_v40 }
  0xe9   :  { %v576_v31 = vadd.s32 %v575_v7, %v565_v44  ;;  %v306_v13 = vsel %vm1115_vm8, 0, %v1114_v50  ;;  %v450_v5 = vadd.s32 %v449_v49, %v445_v17  ;;  %v588_v58 = vshll.u32 %v1561_v48, 16  ;;  %933 = vmatpush.msra.mxu3 %v852_v38  ;;  %v834_v17 = vld [vmem:[#allocation2 + $0x88] sm:$0xff] }
  0xea   :  { %v591_v2 = vsel %vm590_vm10, 1, %v1231_v62  ;;  %v291_v55 = vadd.s32 %v1685_v61, %v1688_v57  ;;  %v307_v20 = vsub.s32 32, %v306_v13  ;;  %v311_v54 = vsub.s32 4294967266, %v306_v13 }
  0xeb   :  { %v593_v59 = vadd.s32 %v591_v2, %v1566_v27  ;;  %v725_v29 = vadd.s32 %v719_v46, %v715_v37  ;;  %vm199_vm11 = vcmp.lt.s32.totalorder %v1316_v12, 0  ;;  %v451_v52 = vadd.s32 536870912, %v450_v5 }
  0xec   :  { %v567_v3 = vshrl.u32 %v1495_v18, 16  ;;  %vm594_vm12 = vc.u32 %v592_v36, %v588_v58  ;;  %v308_v24 = vshll.u32 %v299_v16, %v306_v13  ;;  %v309_v1 = vshrl.u32 %v291_v55, %v307_v20  ;;  %v835_v16 = vld [vmem:[#allocation2 + $0x90] sm:$0xff]  ;;  %v850_v13 = vld [vmem:[#allocation2 + $0x108] sm:$0xff] }
  0xed   :  { %v312_v47 = vadd.s32 127, %v311_v54  ;;  %v595_v21 = vsel %vm594_vm12, 1, %v1231_v62  ;;  %v1787_v9 = vshrl.u32 %v451_v52, 30  ;;  %v587_v61 = vshrl.u32 %v1519_v25, 16  ;;  %914 = vmatpush.msra.mxu2 %v835_v16  ;;  %v849_v52 = vld [vmem:[#allocation2 + $0x100] sm:$0xff] }
  0xee   :  { %v1789_v0 = vadd.s32 %v576_v31, %v567_v3  ;;  %v597_v57 = vadd.s32 %v595_v21, %v593_v59  ;;  %v724_v27 = vsel %vm1772_vm7, 1, %v1231_v62  ;;  %v310_v46 = vor.u32 %v309_v1, %v308_v24  ;;  %v851_v31 = vld [vmem:[#allocation2 + $0x110] sm:$0xff] }
  0xef   :  { %v313_v41 = vshll.u32 %v312_v47, 23  ;;  %v589_v18 = vshrl.u32 %v1561_v48, 16  ;;  %v453_v37 = vshll.u32 %v1787_v9, 30  ;;  %v1797_v44 = vadd.s32 %v592_v36, %v588_v58  ;;  %v833_v36 = vld [vmem:[#allocation2 + $0x80] sm:$0xff]  ;;  %915 = vmatpush.msra.mxu2 %v834_v17  ;;  %934 = vmatpush.msra.mxu3 %v851_v31 }
  0xf0   :  { %v598_v7 = vadd.s32 %v597_v57, %v587_v61  ;;  %vm1799_vm13 = vc.u32 %v725_v29, %v721_v11  ;;  %v698_v25 = vsel %vm694_vm1, %v1648_v26, %v1588_v60  ;;  %v737_v48 = vmul.u32 %v735_v33, %v1570_v45  ;;  %v870_v11 = vld [vmem:[#allocation2 + $0x1a8] sm:$0xff]  ;;  %v869_v26 = vld [vmem:[#allocation2 + $0x1a0] sm:$0xff] }
  0xf1   :  { %v314_v42 = vor.u32 4788187, %v313_v41  ;;  %v321_v51 = vsub.s32 4, %v1728_v43  ;;  %v726_v49 = vadd.s32 %v724_v27, %v718_v10  ;;  %v1811_v58 = vsub.s32 %v450_v5, %v453_v37  ;;  %951 = vmatpush.msrb.mxu0 %v870_v11  ;;  %916 = vmatpush.msra.mxu2 %v833_v36 }
  0xf2   :  { %v599_v2 = vadd.s32 %v598_v7, %v589_v18  ;;  %vm602_vm1 = vc.u32 %v1789_v0, %v1797_v44  ;;  %v317_v45 = vcvt.s32.f32 %v310_v46  ;;  %v728_v55 = vsel %vm1799_vm13, 1, %v1231_v62  ;;  %935 = vmatpush.msra.mxu3 %v850_v13 }
  0xf3   :  { %v315_v60 = vand.u32 2147483647, %v314_v42  ;;  %v741_v10 = vshll.u32 %v1767_v34, 16  ;;  %v1822_v5 = vmul.u32 %v735_v33, %v1578_v14  ;;  %vm455_vm14 = vcmp.lt.s32.totalorder %v1811_v58, 0  ;;  %952 = vmatpush.msrb.mxu0 %v869_v26 }
  0xf4   :  { %v456_v20 = vsub.s32 0, %v1811_v58  ;;  %v603_v54 = vadd.s32 1, %v599_v2  ;;  %v700_v59 = vsel %vm696_vm2, %v1590_v35, %v1657_v4  ;;  %v1988_v29 = vand.u32 2147483647, %v1316_v12  ;;  %936 = vmatpush.msra.mxu3 %v849_v52 }
  0xf5   :  { %v318_v3 = vmul.f32 %v317_v45, %v315_v60  ;;  %v322_v33 = vsel %vm199_vm11, %v321_v51, %v1728_v43  ;;  %v730_v4 = vadd.s32 %v728_v55, %v726_v49  ;;  %vm745_vm2 = vc.u32 %v737_v48, %v741_v10 }
  0xf6   :  { %vm1832_vm9 = vcmp.le.f32.partialorder %v1988_v29, 0.7853982  ;;  %v457_v24 = vsel %vm455_vm14, %v456_v20, %v1811_v58  ;;  %v604_v35 = vsel %vm602_vm1, %v603_v54, %v599_v2  ;;  %v740_v1 = vmul.u32 %v736_v39, %v1578_v14 }
  0xf7   :  { %v319_v47 = vxor.u32 2147483648, %v318_v3  ;;  %v458_v21 = vclz %v457_v24  ;;  %v1991_v43 = vmul.u32 %v1377_v15, %v1470_v28  ;;  %v324_v57 = vsel %vm1832_vm9, 0, %v322_v33 }
  0xf8   :  { %v720_v27 = vshrl.u32 %v1722_v6, 16  ;;  %v743_v46 = vshll.u32 %v1822_v5, 16  ;;  %v746_v41 = vsel %vm745_vm2, 1, %v1231_v62  ;;  %v747_v39 = vadd.s32 %v741_v10, %v737_v48 }
  0xf9   :  { %v605_v61 = vadd.s32 %v604_v35, %v1991_v43  ;;  %v320_v18 = vsel %vm199_vm11, %v319_v47, %v318_v3  ;;  %v1117_v22 = vadd.s32 4294967294, %v458_v21  ;;  %v1858_v16 = vsel %vm695_vm3, %v698_v25, %v700_v59  ;;  %v868_v3 = vld [vmem:[#allocation2 + $0x198] sm:$0xff] }
  0xfa   :  { %v1863_v15 = vsel %vm1832_vm9, %v1316_v12, %v320_v18  ;;  %v731_v28 = vadd.s32 %v730_v4, %v720_v27  ;;  %v748_v6 = vadd.s32 %v746_v41, %v740_v1  ;;  %vm749_vm4 = vc.u32 %v747_v39, %v743_v46  ;;  %953 = vmatpush.msrb.mxu0 %v868_v3 }
  0xfb   :  { %v606_v14 = vadd.s32 536870912, %v605_v61  ;;  %v325_v38 = vmul.f32 %v1863_v15, %v1863_v15  ;;  %vm1118_vm15 = vcmp.lt.s32.totalorder %v1117_v22, 0  ;;  %v341_v37 = vadd.s32 3, %v324_v57 }
  0xfc   :  { %v446_v8 = vadd.s32 %v1747_v30, %v1753_v56  ;;  %v461_v7 = vsel %vm1118_vm15, 0, %v1117_v22  ;;  %v750_v50 = vsel %vm749_vm4, 1, %v1231_v62  ;;  %v722_v51 = vshrl.u32 %v1740_v32, 16 }
  0xfd   :  { %v1867_v40 = vshrl.u32 %v606_v14, 30  ;;  %v326_v25 = vmul.f32 -0.001358992, %v325_v38  ;;  %v333_v48 = vmul.f32 -0.00019511016, %v325_v38  ;;  %v462_v42 = vsub.s32 32, %v461_v7 }
  0xfe   :  { %v466_v17 = vsub.s32 4294967266, %v461_v7  ;;  %v742_v11 = vshrl.u32 %v1767_v34, 16  ;;  %v752_v49 = vadd.s32 %v750_v50, %v748_v6  ;;  %v1875_v60 = vadd.s32 %v731_v28, %v722_v51 }
  0xff   :  { %v608_v31 = vshll.u32 %v1867_v40, 30  ;;  %v327_v36 = vadd.f32 0.041655596, %v326_v25  ;;  %v334_v13 = vadd.f32 0.008332121, %v333_v48  ;;  %v464_v2 = vshrl.u32 %v446_v8, %v462_v42 }
 0x100   :  { %v463_v30 = vshll.u32 %v1811_v58, %v461_v7  ;;  %v467_v56 = vadd.s32 127, %v466_v17  ;;  %v753_v45 = vadd.s32 %v752_v49, %v742_v11  ;;  %v744_v32 = vshrl.u32 %v1822_v5, 16 }
 0x101   :  { %v1878_v62 = vsub.s32 %v605_v61, %v608_v31  ;;  %v328_v26 = vmul.f32 %v327_v36, %v325_v38  ;;  %v335_v55 = vmul.f32 %v334_v13, %v325_v38  ;;  %v1881_v10 = vadd.s32 %v747_v39, %v743_v46 }
 0x102   :  { %v465_v20 = vor.u32 %v464_v2, %v463_v30  ;;  %v468_v34 = vshll.u32 %v467_v56, 23  ;;  %v755_v59 = vmul.u32 %v1540_v63, %v1858_v16  ;;  %v754_v33 = vadd.s32 %v753_v45, %v744_v32  ;;  %v866_v32 = vld [vmem:[#allocation2 + $0x188] sm:$0xff] }
 0x103   :  { %vm610_vm3 = vcmp.lt.s32.totalorder %v1878_v62, 0  ;;  %v611_v54 = vsub.s32 0, %v1878_v62  ;;  %v329_v58 = vadd.f32 -0.4999988, %v328_v26  ;;  %v336_v29 = vadd.f32 -0.16666654, %v335_v55 }
 0x104   :  { %v342_v24 = vand.u32 3, %v341_v37  ;;  %v469_v35 = vor.u32 4788187, %v468_v34  ;;  %vm757_vm5 = vc.u32 %v1875_v60, %v1881_v10  ;;  %v758_v21 = vadd.s32 1, %v754_v33 }
 0x105   :  { %v612_v5 = vsel %vm610_vm3, %v611_v54, %v1878_v62  ;;  %v330_v4 = vmul.f32 %v329_v58, %v325_v38  ;;  %v337_v1 = vmul.f32 %v336_v29, %v325_v38  ;;  %vm340_vm6 = vweird.f32 %v1316_v12 }
 0x106   :  { %v613_v47 = vclz %v612_v5  ;;  %vm354_vm7 = vcmp.lt.s32.totalorder %v1319_v19, 0  ;;  %v470_v63 = vand.u32 2147483647, %v469_v35  ;;  %v472_v43 = vcvt.s32.f32 %v465_v20 }
 0x107   :  { %v476_v61 = vsub.s32 4, %v1787_v9  ;;  %v331_v57 = vadd.f32 1.0, %v330_v4  ;;  %v338_v27 = vadd.f32 1.0, %v337_v1  ;;  %v759_v41 = vsel %vm757_vm5, %v758_v21, %v754_v33 }
 0x108   :  { %v1120_v46 = vadd.s32 4294967294, %v613_v47  ;;  %vm343_vm8 = vcmp.lt.s32.totalorder %v342_v24, 2  ;;  %v1992_v18 = vand.u32 2147483647, %v1319_v19  ;;  %v473_v14 = vmul.f32 %v472_v43, %v470_v63 }
 0x109   :  { %v760_v39 = vadd.s32 %v759_v41, %v755_v59  ;;  %v339_v16 = vmul.f32 %v338_v27, %v1863_v15  ;;  %vm344_vm11 = vcmp.eq.s32.totalorder %v342_v24, 0  ;;  %v348_v28 = vxor.u32 2147483648, %v331_v57  ;;  %v865_v59 = vld [vmem:[#allocation2 + $0x180] sm:$0xff] }
 0x10a   :  { %vm1895_vm10 = vcmp.le.f32.partialorder %v1992_v18, 0.7853982  ;;  %vm1121_vm12 = vcmp.lt.s32.totalorder %v1120_v46, 0  ;;  %vm347_vm13 = vcmp.eq.s32.totalorder %v342_v24, 2  ;;  %v474_v6 = vxor.u32 2147483648, %v473_v14 }
 0x10b   :  { %v616_v38 = vsel %vm1121_vm12, 0, %v1120_v46  ;;  %v761_v37 = vadd.s32 536870912, %v760_v39  ;;  %v345_v8 = vxor.u32 2147483648, %v339_v16  ;;  %v477_v7 = vsel %vm354_vm7, %v476_v61, %v1787_v9 }
 0x10c   :  { %v601_v50 = vadd.s32 %v1797_v44, %v1789_v0  ;;  %v617_v25 = vsub.s32 32, %v616_v38  ;;  %v349_v48 = vsel %vm347_vm13, %v348_v28, %v339_v16  ;;  %v475_v15 = vsel %vm354_vm7, %v474_v6, %v473_v14 }
 0x10d   :  { %v621_v42 = vsub.s32 4294967266, %v616_v38  ;;  %v1907_v51 = vshrl.u32 %v761_v37, 30  ;;  %v346_v17 = vsel %vm344_vm11, %v331_v57, %v345_v8  ;;  %v478_v31 = vsel %vm1895_vm10, %v1319_v19, %v475_v15 }
 0x10e   :  { %v618_v11 = vshll.u32 %v1878_v62, %v616_v38  ;;  %v619_v49 = vshrl.u32 %v601_v50, %v617_v25  ;;  %v350_v9 = vsel %vm343_vm8, %v346_v17, %v349_v48  ;;  %v480_v36 = vmul.f32 %v478_v31, %v478_v31  ;;  %v867_v62 = vld [vmem:[#allocation2 + $0x190] sm:$0xff] }
 0x10f   :  { %v622_v0 = vadd.s32 127, %v621_v42  ;;  %v763_v44 = vshll.u32 %v1907_v51, 30  ;;  %v351_v13 = vsel %vm340_vm6, nan, %v350_v9  ;;  %v479_v55 = vsel %vm1895_vm10, 0, %v477_v7  ;;  %954 = vmatpush.msrb.mxu0 %v867_v62 }
 0x110   :  { %v620_v2 = vor.u32 %v619_v49, %v618_v11  ;;  %897 = vmatmul.f32.vlgmr.msra.gmra.mxu1 %v351_v13  ;;  %v481_v30 = vmul.f32 -0.001358992, %v480_v36  ;;  %v488_v56 = vmul.f32 -0.00019511016, %v480_v36  ;;  %v496_v33 = vadd.s32 3, %v479_v55 }
 0x111   :  { %v623_v45 = vshll.u32 %v622_v0, 23  ;;  %v764_v26 = vsub.s32 %v760_v39, %v763_v44  ;;  %955 = vmatpush.msrb.mxu0 %v866_v32  ;;  %vm509_vm14 = vcmp.lt.s32.totalorder %v1322_v23, 0  ;;  %v1995_v57 = vand.u32 2147483647, %v1322_v23 }
 0x112   :  { %v482_v20 = vadd.f32 0.041655596, %v481_v30  ;;  %v489_v34 = vadd.f32 0.008332121, %v488_v56  ;;  %v627_v3 = vcvt.s32.f32 %v620_v2  ;;  %v497_v61 = vand.u32 3, %v496_v33 }
 0x113   :  { %v624_v54 = vor.u32 4788187, %v623_v45  ;;  %vm765_vm1 = vcmp.lt.s32.totalorder %v764_v26, 0  ;;  %v766_v58 = vsub.s32 0, %v764_v26  ;;  %956 = vmatpush.msrb.mxu0 %v865_v59  ;;  %vm1922_vm9 = vcmp.le.f32.partialorder %v1995_v57, 0.7853982 }
 0x114   :  { %v483_v12 = vmul.f32 %v482_v20, %v480_v36  ;;  %v490_v29 = vmul.f32 %v489_v34, %v480_v36  ;;  %v631_v22 = vsub.s32 4, %v1867_v40  ;;  %vm498_vm15 = vcmp.lt.s32.totalorder %v497_v61, 2 }
 0x115   :  { %v625_v52 = vand.u32 2147483647, %v624_v54  ;;  %v767_v24 = vsel %vm765_vm1, %v766_v58, %v764_v26  ;;  %vm499_vm4 = vcmp.eq.s32.totalorder %v497_v61, 0  ;;  %v756_v37 = vadd.s32 %v1881_v10, %v1875_v60 }
 0x116   :  { %v484_v35 = vadd.f32 -0.4999988, %v483_v12  ;;  %v491_v5 = vadd.f32 -0.16666654, %v490_v29  ;;  %v768_v1 = vclz %v767_v24  ;;  %vm502_vm3 = vcmp.eq.s32.totalorder %v497_v61, 2 }
 0x117   :  { %v628_v4 = vmul.f32 %v627_v3, %v625_v52  ;;  %v632_v48 = vsel %vm509_vm14, %v631_v22, %v1867_v40  ;;  %vm495_vm5 = vweird.f32 %v1319_v19  ;;  %vm664_vm6 = vcmp.lt.s32.totalorder %v1354_v53, 0  ;;  %v994_v52 = vld [vmem:[#allocation4 + $0x8] sm:$0xff] }
 0x118   :  { %v485_v47 = vmul.f32 %v484_v35, %v480_v36  ;;  %v492_v21 = vmul.f32 %v491_v5, %v480_v36  ;;  %v1123_v43 = vadd.s32 4294967294, %v768_v1  ;;  %v634_v44 = vsel %vm1922_vm9, 0, %v632_v48 }
 0x119   :  { %v629_v63 = vxor.u32 2147483648, %v628_v4  ;;  %v651_v45 = vadd.s32 3, %v634_v44  ;;  %v1998_v29 = vand.u32 2147483647, %v1354_v53  ;;  %v786_v24 = vsub.s32 4, %v1907_v51  ;;  %v1004_v44 = vld [vmem:[#allocation4 + $0x58] sm:$0xff] }
 0x11a   :  { %v486_v46 = vadd.f32 1.0, %v485_v47  ;;  %v493_v41 = vadd.f32 1.0, %v492_v21  ;;  %vm1124_vm2 = vcmp.lt.s32.totalorder %v1123_v43, 0  ;;  %vm650_vm12 = vweird.f32 %v1322_v23 }
 0x11b   :  { %v630_v18 = vsel %vm509_vm14, %v629_v63, %v628_v4  ;;  %v771_v39 = vsel %vm1124_vm2, 0, %v1123_v43  ;;  %v652_v54 = vand.u32 3, %v651_v45  ;;  %vm1944_vm7 = vcmp.le.f32.partialorder %v1998_v29, 0.7853982 }
 0x11c   :  { %v633_v14 = vsel %vm1922_vm9, %v1322_v23, %v630_v18  ;;  %v494_v16 = vmul.f32 %v493_v41, %v478_v31  ;;  %v503_v28 = vxor.u32 2147483648, %v486_v46  ;;  %v772_v38 = vsub.s32 32, %v771_v39 }
 0x11d   :  { %v635_v6 = vmul.f32 %v633_v14, %v633_v14  ;;  %v776_v8 = vsub.s32 4294967266, %v771_v39  ;;  %v773_v15 = vshll.u32 %v764_v26, %v771_v39  ;;  %vm654_vm8 = vcmp.eq.s32.totalorder %v652_v54, 0 }
 0x11e   :  { %v500_v7 = vxor.u32 2147483648, %v494_v16  ;;  %v774_v42 = vshrl.u32 %v756_v37, %v772_v38  ;;  %v504_v11 = vsel %vm502_vm3, %v503_v28, %v494_v16  ;;  %vm657_vm10 = vcmp.eq.s32.totalorder %v652_v54, 2 }
 0x11f   :  { %v636_v50 = vmul.f32 -0.001358992, %v635_v6  ;;  %v643_v25 = vmul.f32 -0.00019511016, %v635_v6  ;;  %v777_v17 = vadd.s32 127, %v776_v8  ;;  %vm653_vm11 = vcmp.lt.s32.totalorder %v652_v54, 2 }
 0x120   :  { %v501_v31 = vsel %vm499_vm4, %v486_v46, %v500_v7  ;;  %v775_v10 = vor.u32 %v774_v42, %v773_v15  ;;  %v787_v61 = vsel %vm664_vm6, %v786_v24, %v1907_v51  ;;  %vm805_vm9 = vweird.f32 %v1354_v53  ;;  %v1143_v15 = vld [vmem:[%s1970_s2] sm:$0x1f] }
 0x121   :  { %v637_v49 = vadd.f32 0.041655596, %v636_v50  ;;  %v644_v9 = vadd.f32 0.008332121, %v643_v25  ;;  %v505_v60 = vsel %vm498_vm15, %v501_v31, %v504_v11  ;;  %v778_v36 = vshll.u32 %v777_v17, 23  ;;  %v1008_v11 = vld [vmem:[#allocation4 + $0x78] sm:$0xff] }
 0x122   :  { %v506_v0 = vsel %vm495_vm5, nan, %v505_v60  ;;  %v782_v55 = vcvt.s32.f32 %v775_v10  ;;  %v789_v46 = vsel %vm1944_vm7, 0, %v787_v61  ;;  %v87_v42 = vperm.slane %v1143_v15, 4  ;;  %1011 = vmatpush.msrb.mxu1 %v1008_v11  ;;  %v1006_v60 = vld [vmem:[#allocation4 + $0x68] sm:$0xff]  ;;  %v993_v24 = vld [vmem:[#allocation4] sm:$0xff] }
 0x123   :  { %v638_v13 = vmul.f32 %v637_v49, %v635_v6  ;;  %v645_v2 = vmul.f32 %v644_v9, %v635_v6  ;;  %917 = vmatmul.f32.vlgmr.msra.gmra.mxu2 %v506_v0  ;;  %v779_v40 = vor.u32 4788187, %v778_v36  ;;  %v806_v39 = vadd.s32 3, %v789_v46  ;;  %v1007_v49 = vld [vmem:[#allocation4 + $0x70] sm:$0xff]  ;;  %v1005_v0 = vld [vmem:[#allocation4 + $0x60] sm:$0xff]  ;;  %v1071_v15 = vld [vmem:[#allocation6 + $0x40] sm:$0xff] }
 0x124   :  { %1012 = vmatpush.msrb.mxu1 %v1007_v49  ;;  %v1069_v49 = vld [vmem:[#allocation6 + $0x30] sm:$0xff] }
 0x125   :  { %v639_v30 = vadd.f32 -0.4999988, %v638_v13  ;;  %v646_v56 = vadd.f32 -0.16666654, %v645_v2  ;;  %v780_v26 = vand.u32 2147483647, %v779_v40 }
 0x126   :  { %v807_v38 = vand.u32 3, %v806_v39  ;;  %1013 = vmatpush.msrb.mxu1 %v1006_v60  ;;  %v1003_v2 = vld [vmem:[#allocation4 + $0x50] sm:$0xff] }
 0x127   :  { %v640_v62 = vmul.f32 %v639_v30, %v635_v6  ;;  %v647_v32 = vmul.f32 %v646_v56, %v635_v6  ;;  %v783_v19 = vmul.f32 %v782_v55, %v780_v26  ;;  %v1002_v30 = vld [vmem:[#allocation4 + $0x48] sm:$0xff]  ;;  %v1001_v56 = vld [vmem:[#allocation4 + $0x40] sm:$0xff]  ;;  %v1000_v55 = vld [vmem:[#allocation4 + $0x38] sm:$0xff] }
 0x128   :  { %vm809_vm13 = vcmp.eq.s32.totalorder %v807_v38, 0  ;;  %vm812_vm1 = vcmp.eq.s32.totalorder %v807_v38, 2  ;;  %vm808_vm14 = vcmp.lt.s32.totalorder %v807_v38, 2  ;;  %1014 = vmatpush.msrb.mxu1 %v1005_v0  ;;  %v1078_v38 = vld [vmem:[#allocation6 + $0x78] sm:$0xff]  ;;  %v1068_v60 = vld [vmem:[#allocation6 + $0x28] sm:$0xff] }
 0x129   :  { %v641_v20 = vadd.f32 1.0, %v640_v62  ;;  %v648_v34 = vadd.f32 1.0, %v647_v32  ;;  %v784_v59 = vxor.u32 2147483648, %v783_v19  ;;  %v999_v32 = vld [vmem:[#allocation4 + $0x30] sm:$0xff]  ;;  %1081 = vmatpush.msrb.mxu2 %v1078_v38  ;;  %v1066_v0 = vld [vmem:[#allocation6 + $0x18] sm:$0xff] }
 0x12a   :  { %1015 = vmatpush.msrb.mxu1 %v1004_v44  ;;  %v1065_v44 = vld [vmem:[#allocation6 + $0x10] sm:$0xff] }
 0x12b   :  { %v649_v58 = vmul.f32 %v648_v34, %v633_v14  ;;  %v658_v12 = vxor.u32 2147483648, %v641_v20  ;;  %v785_v3 = vsel %vm664_vm6, %v784_v59, %v783_v19  ;;  %v997_v34 = vld [vmem:[#allocation4 + $0x20] sm:$0xff]  ;;  %v996_v59 = vld [vmem:[#allocation4 + $0x18] sm:$0xff] }
 0x12c   :  { %v788_v35 = vsel %vm1944_vm7, %v1354_v53, %v785_v3  ;;  %1016 = vmatpush.msrb.mxu1 %v1003_v2  ;;  %v1064_v2 = vld [vmem:[#allocation6 + $0x8] sm:$0xff] }
 0x12d   :  { %v655_v33 = vxor.u32 2147483648, %v649_v58  ;;  %v790_v5 = vmul.f32 %v788_v35, %v788_v35  ;;  %v659_v1 = vsel %vm657_vm10, %v658_v12, %v649_v58  ;;  %v995_v12 = vld [vmem:[#allocation4 + $0x10] sm:$0xff] }
 0x12e   :  { %1017 = vmatpush.msrb.mxu1 %v1002_v30 }
 0x12f   :  { %v656_v4 = vsel %vm654_vm8, %v641_v20, %v655_v33  ;;  %v791_v21 = vmul.f32 -0.001358992, %v790_v5  ;;  %v798_v63 = vmul.f32 -0.00019511016, %v790_v5  ;;  %v998_v20 = vld [vmem:[#allocation4 + $0x28] sm:$0xff] }
 0x130   :  { %v660_v47 = vsel %vm653_vm11, %v656_v4, %v659_v1  ;;  %1018 = vmatpush.msrb.mxu1 %v1001_v56  ;;  %v1063_v56 = vld [vmem:[#allocation6] sm:$0xff] }
 0x131   :  { %v661_v43 = vsel %vm650_vm12, nan, %v660_v47  ;;  %v792_v57 = vadd.f32 0.041655596, %v791_v21  ;;  %v799_v27 = vadd.f32 0.008332121, %v798_v63 }
 0x132   :  { %937 = vmatmul.f32.vlgmr.msra.gmra.mxu3 %v661_v43  ;;  %1019 = vmatpush.msrb.mxu1 %v1000_v55 }
 0x133   :  { %v793_v41 = vmul.f32 %v792_v57, %v790_v5  ;;  %v800_v18 = vmul.f32 %v799_v27, %v790_v5 }
 0x134   :  { %1020 = vmatpush.msrb.mxu1 %v999_v32 }
 0x135   :  { %v794_v22 = vadd.f32 -0.4999988, %v793_v41  ;;  %v801_v14 = vadd.f32 -0.16666654, %v800_v18 }
 0x136   :  { %1021 = vmatpush.msrb.mxu1 %v998_v20 }
 0x137   :  { %v795_v23 = vmul.f32 %v794_v22, %v790_v5  ;;  %v802_v16 = vmul.f32 %v801_v14, %v790_v5 }
 0x138   :  { %1022 = vmatpush.msrb.mxu1 %v997_v34 }
 0x139   :  { %v796_v28 = vadd.f32 1.0, %v795_v23  ;;  %v803_v6 = vadd.f32 1.0, %v802_v16 }
 0x13a   :  { %1023 = vmatpush.msrb.mxu1 %v996_v59 }
 0x13b   :  { %v804_v37 = vmul.f32 %v803_v6, %v788_v35  ;;  %v813_v8 = vxor.u32 2147483648, %v796_v28 }
 0x13c   :  { %1024 = vmatpush.msrb.mxu1 %v995_v12 }
 0x13d   :  { %v810_v7 = vxor.u32 2147483648, %v804_v37  ;;  %v814_v50 = vsel %vm812_vm1, %v813_v8, %v804_v37  ;;  %v194_v17 = vpop.f32.mrf.mxu0  ;;  %v1077_v37 = vld [vmem:[#allocation6 + $0x70] sm:$0xff]  ;;  %v1076_v8 = vld [vmem:[#allocation6 + $0x68] sm:$0xff] }
 0x13e   :  { %v195_v31 = vadd.f32 %v194_v17, %v87_v42  ;;  %1025 = vmatpush.msrb.mxu1 %v994_v52  ;;  %1082 = vmatpush.msrb.mxu2 %v1077_v37 }
 0x13f   :  { %v811_v51 = vsel %vm809_vm13, %v796_v28, %v810_v7  ;;  %v1075_v7 = vld [vmem:[#allocation6 + $0x60] sm:$0xff] }
 0x140   :  { %v815_v25 = vsel %vm808_vm14, %v811_v51, %v814_v50  ;;  %1026 = vmatpush.msrb.mxu1 %v993_v24  ;;  %1083 = vmatpush.msrb.mxu2 %v1076_v8  ;;  %v1074_v51 = vld [vmem:[#allocation6 + $0x58] sm:$0xff]  ;;  %v1073_v50 = vld [vmem:[#allocation6 + $0x50] sm:$0xff] }
 0x141   :  { %v816_v48 = vsel %vm805_vm9, nan, %v815_v25  ;;  %v1141_v25 = vld [vmem:[#allocation4 + $0x80] ss:$0 sm:$0xff] }
 0x142   :  { %957 = vmatmul.f32.vlgmr.msrb.gmra.mxu0 %v816_v48  ;;  %1084 = vmatpush.msrb.mxu2 %v1075_v7  ;;  %v1072_v48 = vld [vmem:[#allocation6 + $0x48] sm:$0xff] }
 0x144   :  { %1085 = vmatpush.msrb.mxu2 %v1074_v51 }
 0x146   :  { %1086 = vmatpush.msrb.mxu2 %v1073_v50 }
 0x148   :  { %1087 = vmatpush.msrb.mxu2 %v1072_v48 }
 0x14a   :  { %1088 = vmatpush.msrb.mxu2 %v1071_v15 }
 0x18d   :  { %v898_v9 = vpop.f32.mrf.mxu1 }
 0x18e   :  { %v899_v36 = vadd.f32 %v898_v9, %v195_v31  ;;  %v1070_v31 = vld [vmem:[#allocation6 + $0x38] sm:$0xff] }
 0x18f   :  { %1089 = vmatpush.msrb.mxu2 %v1070_v31 }
 0x191   :  { %1090 = vmatpush.msrb.mxu2 %v1069_v49 }
 0x193   :  { %1091 = vmatpush.msrb.mxu2 %v1068_v60 }
 0x1a6   :  { %v918_v10 = vpop.f32.mrf.mxu2 }
 0x1a7   :  { %v919_v53 = vadd.f32 %v918_v10, %v899_v36  ;;  %v1067_v10 = vld [vmem:[#allocation6 + $0x20] sm:$0xff] }
 0x1a8   :  { %1092 = vmatpush.msrb.mxu2 %v1067_v10 }
 0x1aa   :  { %1093 = vmatpush.msrb.mxu2 %v1066_v0 }
 0x1ac   :  { %1094 = vmatpush.msrb.mxu2 %v1065_v44 }
 0x1ae   :  { %1095 = vmatpush.msrb.mxu2 %v1064_v2 }
 0x1b0   :  { %1096 = vmatpush.msrb.mxu2 %v1063_v56 }
 0x1b5   :  { %v938_v13 = vpop.f32.mrf.mxu3 }
 0x1b6   :  { %v939_v40 = vadd.f32 %v938_v13, %v919_v53 }
 0x1bf   :  { %v958_v45 = vpop.f32.mrf.mxu0 }
 0x1c0   :  { %v959_v26 = vadd.f32 %v958_v45, %v939_v40 }
 0x1c2   :  { %v1125_v62 = vclamps-f32 %v959_v26, 6.0 }
 0x1c4   :  { %v963_v19 = vmul.f32 %v1125_v62, %v1125_v62 }
 0x1c6   :  { %v971_v54 = vadd.f32 630.0, %v963_v19  ;;  %v964_v33 = vmul.f32 36.0, %v963_v19 }
 0x1c8   :  { %v972_v58 = vmul.f32 %v971_v54, %v963_v19  ;;  %v965_v4 = vadd.f32 6930.0, %v964_v33 }
 0x1ca   :  { %v973_v29 = vadd.f32 51975.0, %v972_v58  ;;  %v966_v21 = vmul.f32 %v965_v4, %v963_v19 }
 0x1cc   :  { %v974_v3 = vmul.f32 %v973_v29, %v963_v19  ;;  %v967_v61 = vadd.f32 270270.0, %v966_v21 }
 0x1ce   :  { %v975_v35 = vadd.f32 945945.0, %v974_v3  ;;  %v968_v46 = vmul.f32 %v967_v61, %v963_v19 }
 0x1d0   :  { %v976_v5 = vmul.f32 %v975_v35, %v963_v19  ;;  %v969_v22 = vadd.f32 2027025.0, %v968_v46 }
 0x1d2   :  { %v977_v1 = vadd.f32 2027025.0, %v976_v5  ;;  %v970_v23 = vmul.f32 %v1125_v62, %v969_v22 }
 0x1d4   :  { %v979_v47 = vsub.s32 2129587123, %v977_v1 }
 0x1d6   :  { %v981_v63 = vmul.f32 %v979_v47, %v977_v1 }
 0x1d8   :  { %v982_v43 = vsub.f32 2.0, %v981_v63 }
 0x1da   :  { %v983_v57 = vmul.f32 %v982_v43, %v979_v47  ;;  %v1142_v47 = vld [vmem:[#allocation6 + $0x80] ss:$0 sm:$0xff] }
 0x1dc   :  { %v984_v27 = vmul.f32 %v983_v57, %v977_v1 }
 0x1de   :  { %v985_v41 = vsub.f32 2.0, %v984_v27 }
 0x1e0   :  { %v986_v18 = vmul.f32 %v985_v41, %v983_v57 }
 0x1e2   :  { %v987_v14 = vmul.f32 %v986_v18, %v977_v1 }
 0x1e4   :  { %v988_v39 = vsub.f32 2.0, %v987_v14 }
 0x1e6   :  { %v989_v16 = vmul.f32 %v988_v39, %v986_v18 }
 0x1e8   :  { %v990_v28 = vmul.f32 %v989_v16, %v970_v23 }
 0x1ea   :  { %v1126_v6 = vclamps-f32 %v990_v28, 1.0 }
 0x1ec   :  { %1027 = vmatmul.f32.vlgmr.msrb.gmra.mxu1 %v1126_v6 }
 0x269   :  { %v1028_v42 = vpop.f32.mrf.mxu1 }
 0x26a   :  { %v1029_v17 = vadd.f32 %v1141_v25, %v1028_v42 }
 0x26c   :  { %v1127_v11 = vclamps-f32 %v1029_v17, 6.0 }
 0x26e   :  { %v1033_v9 = vmul.f32 %v1127_v11, %v1127_v11 }
 0x270   :  { %v1041_v36 = vadd.f32 630.0, %v1033_v9  ;;  %v1034_v30 = vmul.f32 36.0, %v1033_v9 }
 0x272   :  { %v1042_v53 = vmul.f32 %v1041_v36, %v1033_v9  ;;  %v1035_v55 = vadd.f32 6930.0, %v1034_v30 }
 0x274   :  { %v1043_v13 = vadd.f32 51975.0, %v1042_v53  ;;  %v1036_v19 = vmul.f32 %v1035_v55, %v1033_v9 }
 0x276   :  { %v1044_v40 = vmul.f32 %v1043_v13, %v1033_v9  ;;  %v1037_v54 = vadd.f32 270270.0, %v1036_v19 }
 0x278   :  { %v1045_v45 = vadd.f32 945945.0, %v1044_v40  ;;  %v1038_v12 = vmul.f32 %v1037_v54, %v1033_v9 }
 0x27a   :  { %v1046_v26 = vmul.f32 %v1045_v45, %v1033_v9  ;;  %v1039_v3 = vadd.f32 2027025.0, %v1038_v12 }
 0x27c   :  { %v1047_v62 = vadd.f32 2027025.0, %v1046_v26  ;;  %v1040_v35 = vmul.f32 %v1127_v11, %v1039_v3 }
 0x27e   :  { %v1049_v32 = vsub.s32 2129587123, %v1047_v62 }
 0x280   :  { %v1051_v20 = vmul.f32 %v1049_v32, %v1047_v62 }
 0x282   :  { %v1052_v34 = vsub.f32 2.0, %v1051_v20 }
 0x284   :  { %v1053_v59 = vmul.f32 %v1052_v34, %v1049_v32 }
 0x286   :  { %v1054_v58 = vmul.f32 %v1053_v59, %v1047_v62 }
 0x288   :  { %v1055_v29 = vsub.f32 2.0, %v1054_v58 }
 0x28a   :  { %v1056_v52 = vmul.f32 %v1055_v29, %v1053_v59 }
 0x28c   :  { %v1057_v33 = vmul.f32 %v1056_v52, %v1047_v62 }
 0x28e   :  { %v1058_v24 = vsub.f32 2.0, %v1057_v33 }
 0x290   :  { %v1059_v5 = vmul.f32 %v1058_v24, %v1056_v52 }
 0x292   :  { %v1060_v4 = vmul.f32 %v1059_v5, %v1040_v35 }
 0x294   :  { %v1128_v1 = vclamps-f32 %v1060_v4, 1.0 }
 0x296   :  { %1097 = vmatmul.f32.vlgmr.msrb.gmra.mxu2 %v1128_v1 }
 0x319   :  { %v1098_v21 = vpop.f32.mrf.mxu2 }
 0x31a   :  { %v1099_v63 = vadd.f32 %v1142_v47, %v1098_v21 }
 0x31c   :  { %1101 = vst.msk [vmem:[%s1974_s6] sm:$0xff] %vm93_vm0, %v1099_v63 }
 0x31d   :  { %1106 = vsyncpa [#allocation3], 1 }
 0x31e   :  { %1107 = vsyncpa [#allocation5], 1 }

</bundles_post_ra>
